<compile_context>
chip_gen: v5e
topology: v5e:2x2
jax: 0.10.0
libtpu: 0.0.40
codegen_flags: <defaults>
</compile_context>

<pallas_src>
import functools

import jax
import jax.numpy as jnp
from jax.experimental import pallas as pl
from jax.experimental.pallas import tpu as pltpu


# ---------------------------------------------------------------------------
# Fused kernel: QKV + all heads' attention + output projection for a tile of
# `batch_tile` batch elements per grid step.  grid = (B // batch_tile,)
# ---------------------------------------------------------------------------
def _mha_kernel(x_ref, wqkv_ref, bqkv_ref, rpe_ref, wproj_ref, bproj_ref,
                o_ref, *, n_head, head_size, mask):
    Bt, T, C = x_ref.shape
    H = n_head * head_size

    # Single row-batched stacked QKV matmul: (Bt*T, C) @ (C, 3H) -> (Bt*T, 3H).
    # (reshape only collapses leading dims; the lane dim C is unchanged -> free view)
    x2 = x_ref[...].reshape(Bt * T, C)
    qkv = jnp.dot(x2, wqkv_ref[...], preferred_element_type=jnp.float32)
    qkv = (qkv + bqkv_ref[...]).reshape(Bt, T, 3 * H)

    # NOTE: the PyTorch module divides scores by head_size**(-0.5), i.e. MULTIPLIES
    # by sqrt(head_size).  That scale is already folded into the K columns of
    # w_qkv / b_qkv in the wrapper, so no in-kernel scaling is needed.
    q = qkv[:, :, 0:H]
    k = qkv[:, :, H:2 * H]
    v = qkv[:, :, 2 * H:3 * H]
    # (At realistic d_model, align the Q/K/V segments / per-head slices to 128-lane
    #  boundaries or emit three separate matmuls; at H=32 everything is one vreg.)

    if mask:  # static Python flag, mirrors `if mask:` in the PyTorch forward
        row = jax.lax.broadcasted_iota(jnp.int32, (T, T), 0)
        col = jax.lax.broadcasted_iota(jnp.int32, (T, T), 1)
        causal = (col <= row)[None, :, :]          # (1, T, T), broadcast over batch

    outs = []
    # Static unroll over heads (n_head is small & static).
    for h in range(n_head):
        lo = h * head_size
        q_h = q[:, :, lo:lo + head_size]           # (Bt, T, hs)
        k_h = k[:, :, lo:lo + head_size]
        v_h = v[:, :, lo:lo + head_size]

        # Batched Q @ K^T contracting the last dims: no transpose of K.
        s = jnp.einsum('bqc,bkc->bqk', q_h, k_h,
                       preferred_element_type=jnp.float32)      # (Bt, T, T)

        # rel_pos_scores: einsum('btc,tvc->btv', q_h, rpe_h).  rpe was pre-permuted
        # to (n_head, hs, T, T) so each term is a lane-broadcast multiply-add on
        # the full (Bt, T, T) scores tile.
        rpe_h = rpe_ref[h]                         # (hs, T, T), hoisted per head
        for c in range(head_size):
            s = s + q_h[:, :, c:c + 1] * rpe_h[c]

        if mask:
            # Diagonal is always unmasked, so -inf is NaN-safe (matches
            # torch masked_fill(..., float('-inf'))).
            s = jnp.where(causal, s, -jnp.inf)

        w = jax.nn.softmax(s, axis=-1)
        # TODO(synk): training-mode dropout on attention weights / projection output
        # is not implemented (identity at inference/eval).
        outs.append(jnp.einsum('bqk,bkc->bqc', w, v_h,
                               preferred_element_type=jnp.float32))  # (Bt, T, hs)

    # Head concat + ONE (Bt*T, H) @ (H, Cpad) projection.  Cpad is a multiple of
    # 128, so the result and the store below are fully lane-dense (unmasked vst).
    cat = jnp.concatenate(outs, axis=-1).reshape(Bt * T, H)
    proj = jnp.dot(cat, wproj_ref[...], preferred_element_type=jnp.float32)
    o_ref[...] = proj + bproj_ref[...]


# ---------------------------------------------------------------------------
# Wrapper
# ---------------------------------------------------------------------------
def multi_head_attention(x, params, *, mask, n_head, head_size, batch_tile=None):
    B, T, C = x.shape
    H = n_head * head_size
    Cpad = ((C + 127) // 128) * 128

    if batch_tile is None:
        # Single biggest block = best MXU fill / least per-step overhead on the
        # single-TC chips (v5e/v6e).  On v7x pass batch_tile=pl.cdiv(B, 2) so the
        # 2-step "parallel" grid feeds both TensorCores.
        batch_tile = B
    assert B % batch_tile == 0
    nb = B // batch_tile

    # --- one-time parameter re-layout (plain JAX, outside the kernel) ---
    scale = float(head_size) ** 0.5   # module divides scores by head_size**(-0.5)

    def _stack(w):  # (n_head, C, hs) -> (C, H); head h occupies cols [h*hs, (h+1)*hs)
        return jnp.transpose(w, (1, 0, 2)).reshape(C, H)

    w_qkv = jnp.concatenate(
        [_stack(params["wq"]), _stack(params["wk"]) * scale, _stack(params["wv"])],
        axis=1)
    b_qkv = jnp.concatenate(
        [params["bq"].reshape(1, H), params["bk"].reshape(1, H) * scale,
         jnp.zeros((1, H), dtype=x.dtype)], axis=1)
    # (n_head, block, block, hs) -> (n_head, hs, T, T)
    rpe_c = jnp.transpose(params["rpe"][:, :T, :T, :], (0, 3, 1, 2))
    # Zero-pad projection columns to a 128-lane multiple (free on the MXU, makes
    # every output store an unmasked full-vreg vst).
    w_proj = jnp.pad(params["w_proj"], ((0, 0), (0, Cpad - C)))
    b_proj = jnp.pad(params["b_proj"], ((0, 0), (0, Cpad - C)))

    kernel = functools.partial(_mha_kernel, n_head=n_head,
                               head_size=head_size, mask=mask)

    out_flat = pl.pallas_call(
        kernel,
        out_shape=jax.ShapeDtypeStruct((B * T, Cpad), jnp.float32),
        grid=(nb,),
        in_specs=[
            pl.BlockSpec((batch_tile, T, C), lambda i: (i, 0, 0)),        # x
            pl.BlockSpec((C, 3 * H), lambda i: (0, 0)),                   # w_qkv (resident)
            pl.BlockSpec((1, 3 * H), lambda i: (0, 0)),                   # b_qkv
            pl.BlockSpec((n_head, head_size, T, T),
                         lambda i: (0, 0, 0, 0)),                         # rpe (resident)
            pl.BlockSpec((H, Cpad), lambda i: (0, 0)),                    # w_proj
            pl.BlockSpec((1, Cpad), lambda i: (0, 0)),                    # b_proj
        ],
        out_specs=pl.BlockSpec((batch_tile * T, Cpad), lambda i: (i, 0)),
        compiler_params=pltpu.CompilerParams(
            dimension_semantics=("parallel",)),   # shards grid steps across TCs on v7x
    )(x, w_qkv, b_qkv, rpe_c, w_proj, b_proj)

    return out_flat[:, :C].reshape(B, T, C)


# ---------------------------------------------------------------------------
# Pure-JAX reference (mirrors the PyTorch forward) for correctness checking.
# ---------------------------------------------------------------------------
def reference(x, params, *, mask, n_head, head_size):
    B, T, C = x.shape
    outs = []
    for h in range(n_head):
        q = x @ params["wq"][h] + params["bq"][h, 0]
        k = x @ params["wk"][h] + params["bk"][h, 0]
        v = x @ params["wv"][h]
        scores = (q @ jnp.swapaxes(k, -1, -2)) / (head_size ** (-0.5))
        scores = scores + jnp.einsum("btc,tvc->btv", q,
                                     params["rpe"][h, :T, :T])
        if mask:
            tril = jnp.tril(jnp.ones((T, T)))
            scores = jnp.where(tril == 0, -jnp.inf, scores)
        w = jax.nn.softmax(scores, axis=-1)
        outs.append(w @ v)
    cat = jnp.concatenate(outs, axis=-1)
    return cat @ params["w_proj"] + params["b_proj"][0]


if __name__ == "__main__":
    # hyper-params implied by the module
    block_size = 8
    d_model = 32
    n_head = 4
    head_size = d_model // n_head
    dropout = 0.1  # identity at inference; not applied in the kernel

    B, T = 2, block_size

    key = jax.random.PRNGKey(0)
    ks = jax.random.split(key, 8)
    lin_scale = 1.0 / jnp.sqrt(jnp.float32(d_model))
    params = {
        "wq": jax.random.uniform(ks[0], (n_head, d_model, head_size),
                                 jnp.float32, -lin_scale, lin_scale),
        "bq": jax.random.uniform(ks[1], (n_head, 1, head_size),
                                 jnp.float32, -lin_scale, lin_scale),
        "wk": jax.random.uniform(ks[2], (n_head, d_model, head_size),
                                 jnp.float32, -lin_scale, lin_scale),
        "bk": jax.random.uniform(ks[3], (n_head, 1, head_size),
                                 jnp.float32, -lin_scale, lin_scale),
        "wv": jax.random.uniform(ks[4], (n_head, d_model, head_size),
                                 jnp.float32, -lin_scale, lin_scale),
        "rpe": jax.random.normal(ks[5], (n_head, block_size, block_size,
                                         head_size), jnp.float32),
        "w_proj": jax.random.uniform(ks[6], (n_head * head_size, d_model),
                                     jnp.float32, -lin_scale, lin_scale),
        "b_proj": jax.random.uniform(ks[7], (1, d_model),
                                     jnp.float32, -lin_scale, lin_scale),
    }

    x = jax.random.normal(jax.random.PRNGKey(1), (B, T, d_model), jnp.float32)

    out = multi_head_attention(x, params, mask=True,
                               n_head=n_head, head_size=head_size)
    out = jax.block_until_ready(out)

    ref = reference(x, params, mask=True, n_head=n_head, head_size=head_size)
    assert out.shape == (B, T, d_model)
    assert jnp.allclose(out, ref, rtol=1e-4, atol=1e-4), \
        f"max abs err {jnp.max(jnp.abs(out - ref))}"

    print("KERNEL_OK")
</pallas_src>

<mosaic_0001>
module attributes {stable_mosaic.version = 11 : i64} {
  func.func @_mha_kernel(%arg0: i32, %arg1: memref<2x8x32xf32, #tpu.memory_space<vmem>>, %arg2: memref<32x96xf32, #tpu.memory_space<vmem>>, %arg3: memref<1x96xf32, #tpu.memory_space<vmem>>, %arg4: memref<4x8x8x8xf32, #tpu.memory_space<vmem>>, %arg5: memref<32x128xf32, #tpu.memory_space<vmem>>, %arg6: memref<1x128xf32, #tpu.memory_space<vmem>>, %arg7: memref<16x128xf32, #tpu.memory_space<vmem>>) attributes {dimension_semantics = [#tpu.dimension_semantics<parallel>], iteration_bounds = array<i64: 1>, scalar_prefetch = 0 : i64, scratch_operands = 0 : i64, tpu.core_type = #tpu.core_type<tc>, window_params = [{transform_indices = @transform_0, window_bounds = array<i64: 2, 8, 32>}, {pipeline_mode = #tpu.pipeline_mode<synchronous>, transform_indices = @transform_1, window_bounds = array<i64: 32, 96>}, {pipeline_mode = #tpu.pipeline_mode<synchronous>, transform_indices = @transform_2, window_bounds = array<i64: 1, 96>}, {pipeline_mode = #tpu.pipeline_mode<synchronous>, transform_indices = @transform_3, window_bounds = array<i64: 4, 8, 8, 8>}, {pipeline_mode = #tpu.pipeline_mode<synchronous>, transform_indices = @transform_4, window_bounds = array<i64: 32, 128>}, {pipeline_mode = #tpu.pipeline_mode<synchronous>, transform_indices = @transform_5, window_bounds = array<i64: 1, 128>}, {transform_indices = @transform_6, window_bounds = array<i64: 16, 128>}]} {
    %c0 = arith.constant 0 : index
    %c0_0 = arith.constant 0 : index
    %c0_1 = arith.constant 0 : index
    %0 = vector.load %arg1[%c0, %c0_0, %c0_1] : memref<2x8x32xf32, #tpu.memory_space<vmem>>, vector<2x8x32xf32>
    %1 = vector.shape_cast %0 : vector<2x8x32xf32> to vector<16x32xf32>
    %c0_2 = arith.constant 0 : index
    %c0_3 = arith.constant 0 : index
    %2 = vector.load %arg2[%c0_2, %c0_3] : memref<32x96xf32, #tpu.memory_space<vmem>>, vector<32x96xf32>
    %cst = arith.constant dense<0.000000e+00> : vector<16x96xf32>
    %3 = tpu.matmul %1, %2, %cst {dimension_numbers = #tpu.dot_dimension_numbers<[1], [0], [0], [1], [0, 0, 1, 1], [], []>} : vector<16x32xf32>, vector<32x96xf32>, vector<16x96xf32> -> vector<16x96xf32>
    %c0_4 = arith.constant 0 : index
    %c0_5 = arith.constant 0 : index
    %4 = vector.load %arg3[%c0_4, %c0_5] : memref<1x96xf32, #tpu.memory_space<vmem>>, vector<1x96xf32>
    %5 = vector.broadcast %4 : vector<1x96xf32> to vector<16x96xf32>
    %6 = arith.addf %3, %5 : vector<16x96xf32>
    %7 = vector.shape_cast %6 : vector<16x96xf32> to vector<2x8x96xf32>
    %8 = vector.extract_strided_slice %7 {offsets = [0, 0, 0], sizes = [2, 8, 32], strides = [1, 1, 1]} : vector<2x8x96xf32> to vector<2x8x32xf32>
    %9 = vector.extract_strided_slice %7 {offsets = [0, 0, 32], sizes = [2, 8, 32], strides = [1, 1, 1]} : vector<2x8x96xf32> to vector<2x8x32xf32>
    %10 = vector.extract_strided_slice %7 {offsets = [0, 0, 64], sizes = [2, 8, 32], strides = [1, 1, 1]} : vector<2x8x96xf32> to vector<2x8x32xf32>
    %11 = tpu.iota {dimensions = array<i32: 0>} : vector<8x8xi32>
    %12 = tpu.iota {dimensions = array<i32: 1>} : vector<8x8xi32>
    %13 = arith.cmpi sle, %12, %11 : vector<8x8xi32>
    %14 = vector.shape_cast %13 : vector<8x8xi1> to vector<1x8x8xi1>
    %15 = vector.extract_strided_slice %8 {offsets = [0, 0, 0], sizes = [2, 8, 8], strides = [1, 1, 1]} : vector<2x8x32xf32> to vector<2x8x8xf32>
    %16 = vector.extract_strided_slice %9 {offsets = [0, 0, 0], sizes = [2, 8, 8], strides = [1, 1, 1]} : vector<2x8x32xf32> to vector<2x8x8xf32>
    %17 = vector.extract_strided_slice %10 {offsets = [0, 0, 0], sizes = [2, 8, 8], strides = [1, 1, 1]} : vector<2x8x32xf32> to vector<2x8x8xf32>
    "tpu.trace_start"() <{level = 10 : i32, message = "bqc,bkc->bqk"}> : () -> ()
    %cst_6 = arith.constant dense<0.000000e+00> : vector<2x8x8xf32>
    %18 = tpu.matmul %15, %16, %cst_6 {dimension_numbers = #tpu.dot_dimension_numbers<[2], [2], [1], [1], [0, 0, 0, 1, 1, 1], [0], [0]>} : vector<2x8x8xf32>, vector<2x8x8xf32>, vector<2x8x8xf32> -> vector<2x8x8xf32>
    "tpu.trace_stop"() : () -> ()
    %c0_7 = arith.constant 0 : index
    %c0_8 = arith.constant 0 : index
    %c0_9 = arith.constant 0 : index
    %c0_10 = arith.constant 0 : index
    %19 = vector.load %arg4[%c0_7, %c0_8, %c0_9, %c0_10] : memref<4x8x8x8xf32, #tpu.memory_space<vmem>>, vector<1x8x8x8xf32>
    %20 = vector.shape_cast %19 : vector<1x8x8x8xf32> to vector<8x8x8xf32>
    %21 = vector.extract_strided_slice %15 {offsets = [0, 0, 0], sizes = [2, 8, 1], strides = [1, 1, 1]} : vector<2x8x8xf32> to vector<2x8x1xf32>
    %22 = vector.extract_strided_slice %20 {offsets = [0, 0, 0], sizes = [1, 8, 8], strides = [1, 1, 1]} : vector<8x8x8xf32> to vector<1x8x8xf32>
    %23 = vector.shape_cast %22 : vector<1x8x8xf32> to vector<8x8xf32>
    %24 = vector.shape_cast %23 : vector<8x8xf32> to vector<1x8x8xf32>
    %25 = vector.broadcast %21 : vector<2x8x1xf32> to vector<2x8x8xf32>
    %26 = vector.broadcast %24 : vector<1x8x8xf32> to vector<2x8x8xf32>
    %27 = arith.mulf %25, %26 : vector<2x8x8xf32>
    %28 = arith.addf %18, %27 : vector<2x8x8xf32>
    %29 = vector.extract_strided_slice %15 {offsets = [0, 0, 1], sizes = [2, 8, 1], strides = [1, 1, 1]} : vector<2x8x8xf32> to vector<2x8x1xf32>
    %30 = vector.extract_strided_slice %20 {offsets = [1, 0, 0], sizes = [1, 8, 8], strides = [1, 1, 1]} : vector<8x8x8xf32> to vector<1x8x8xf32>
    %31 = vector.shape_cast %30 : vector<1x8x8xf32> to vector<8x8xf32>
    %32 = vector.shape_cast %31 : vector<8x8xf32> to vector<1x8x8xf32>
    %33 = vector.broadcast %29 : vector<2x8x1xf32> to vector<2x8x8xf32>
    %34 = vector.broadcast %32 : vector<1x8x8xf32> to vector<2x8x8xf32>
    %35 = arith.mulf %33, %34 : vector<2x8x8xf32>
    %36 = arith.addf %28, %35 : vector<2x8x8xf32>
    %37 = vector.extract_strided_slice %15 {offsets = [0, 0, 2], sizes = [2, 8, 1], strides = [1, 1, 1]} : vector<2x8x8xf32> to vector<2x8x1xf32>
    %38 = vector.extract_strided_slice %20 {offsets = [2, 0, 0], sizes = [1, 8, 8], strides = [1, 1, 1]} : vector<8x8x8xf32> to vector<1x8x8xf32>
    %39 = vector.shape_cast %38 : vector<1x8x8xf32> to vector<8x8xf32>
    %40 = vector.shape_cast %39 : vector<8x8xf32> to vector<1x8x8xf32>
    %41 = vector.broadcast %37 : vector<2x8x1xf32> to vector<2x8x8xf32>
    %42 = vector.broadcast %40 : vector<1x8x8xf32> to vector<2x8x8xf32>
    %43 = arith.mulf %41, %42 : vector<2x8x8xf32>
    %44 = arith.addf %36, %43 : vector<2x8x8xf32>
    %45 = vector.extract_strided_slice %15 {offsets = [0, 0, 3], sizes = [2, 8, 1], strides = [1, 1, 1]} : vector<2x8x8xf32> to vector<2x8x1xf32>
    %46 = vector.extract_strided_slice %20 {offsets = [3, 0, 0], sizes = [1, 8, 8], strides = [1, 1, 1]} : vector<8x8x8xf32> to vector<1x8x8xf32>
    %47 = vector.shape_cast %46 : vector<1x8x8xf32> to vector<8x8xf32>
    %48 = vector.shape_cast %47 : vector<8x8xf32> to vector<1x8x8xf32>
    %49 = vector.broadcast %45 : vector<2x8x1xf32> to vector<2x8x8xf32>
    %50 = vector.broadcast %48 : vector<1x8x8xf32> to vector<2x8x8xf32>
    %51 = arith.mulf %49, %50 : vector<2x8x8xf32>
    %52 = arith.addf %44, %51 : vector<2x8x8xf32>
    %53 = vector.extract_strided_slice %15 {offsets = [0, 0, 4], sizes = [2, 8, 1], strides = [1, 1, 1]} : vector<2x8x8xf32> to vector<2x8x1xf32>
    %54 = vector.extract_strided_slice %20 {offsets = [4, 0, 0], sizes = [1, 8, 8], strides = [1, 1, 1]} : vector<8x8x8xf32> to vector<1x8x8xf32>
    %55 = vector.shape_cast %54 : vector<1x8x8xf32> to vector<8x8xf32>
    %56 = vector.shape_cast %55 : vector<8x8xf32> to vector<1x8x8xf32>
    %57 = vector.broadcast %53 : vector<2x8x1xf32> to vector<2x8x8xf32>
    %58 = vector.broadcast %56 : vector<1x8x8xf32> to vector<2x8x8xf32>
    %59 = arith.mulf %57, %58 : vector<2x8x8xf32>
    %60 = arith.addf %52, %59 : vector<2x8x8xf32>
    %61 = vector.extract_strided_slice %15 {offsets = [0, 0, 5], sizes = [2, 8, 1], strides = [1, 1, 1]} : vector<2x8x8xf32> to vector<2x8x1xf32>
    %62 = vector.extract_strided_slice %20 {offsets = [5, 0, 0], sizes = [1, 8, 8], strides = [1, 1, 1]} : vector<8x8x8xf32> to vector<1x8x8xf32>
    %63 = vector.shape_cast %62 : vector<1x8x8xf32> to vector<8x8xf32>
    %64 = vector.shape_cast %63 : vector<8x8xf32> to vector<1x8x8xf32>
    %65 = vector.broadcast %61 : vector<2x8x1xf32> to vector<2x8x8xf32>
    %66 = vector.broadcast %64 : vector<1x8x8xf32> to vector<2x8x8xf32>
    %67 = arith.mulf %65, %66 : vector<2x8x8xf32>
    %68 = arith.addf %60, %67 : vector<2x8x8xf32>
    %69 = vector.extract_strided_slice %15 {offsets = [0, 0, 6], sizes = [2, 8, 1], strides = [1, 1, 1]} : vector<2x8x8xf32> to vector<2x8x1xf32>
    %70 = vector.extract_strided_slice %20 {offsets = [6, 0, 0], sizes = [1, 8, 8], strides = [1, 1, 1]} : vector<8x8x8xf32> to vector<1x8x8xf32>
    %71 = vector.shape_cast %70 : vector<1x8x8xf32> to vector<8x8xf32>
    %72 = vector.shape_cast %71 : vector<8x8xf32> to vector<1x8x8xf32>
    %73 = vector.broadcast %69 : vector<2x8x1xf32> to vector<2x8x8xf32>
    %74 = vector.broadcast %72 : vector<1x8x8xf32> to vector<2x8x8xf32>
    %75 = arith.mulf %73, %74 : vector<2x8x8xf32>
    %76 = arith.addf %68, %75 : vector<2x8x8xf32>
    %77 = vector.extract_strided_slice %15 {offsets = [0, 0, 7], sizes = [2, 8, 1], strides = [1, 1, 1]} : vector<2x8x8xf32> to vector<2x8x1xf32>
    %78 = vector.extract_strided_slice %20 {offsets = [7, 0, 0], sizes = [1, 8, 8], strides = [1, 1, 1]} : vector<8x8x8xf32> to vector<1x8x8xf32>
    %79 = vector.shape_cast %78 : vector<1x8x8xf32> to vector<8x8xf32>
    %80 = vector.shape_cast %79 : vector<8x8xf32> to vector<1x8x8xf32>
    %81 = vector.broadcast %77 : vector<2x8x1xf32> to vector<2x8x8xf32>
    %82 = vector.broadcast %80 : vector<1x8x8xf32> to vector<2x8x8xf32>
    %83 = arith.mulf %81, %82 : vector<2x8x8xf32>
    %84 = arith.addf %76, %83 : vector<2x8x8xf32>
    %cst_11 = arith.constant 0xFF800000 : f32
    %85 = vector.shape_cast %14 : vector<1x8x8xi1> to vector<1x8x8xi1>
    %86 = vector.broadcast %85 : vector<1x8x8xi1> to vector<2x8x8xi1>
    %87 = vector.broadcast %cst_11 : f32 to vector<2x8x8xf32>
    %88 = arith.select %86, %84, %87 : vector<2x8x8xi1>, vector<2x8x8xf32>
    %cst_12 = arith.constant dense<0xFF800000> : vector<2x8xf32>
    %89 = vector.multi_reduction <maximumf>, %88, %cst_12 [2] : vector<2x8x8xf32> to vector<2x8xf32>
    %cst_13 = arith.constant 0xFF800000 : f32
    %90 = vector.broadcast %cst_13 : f32 to vector<2x8xf32>
    %91 = arith.maximumf %90, %89 : vector<2x8xf32>
    %92 = vector.shape_cast %91 : vector<2x8xf32> to vector<2x8x1xf32>
    %93 = vector.broadcast %92 : vector<2x8x1xf32> to vector<2x8x8xf32>
    %94 = arith.subf %88, %93 : vector<2x8x8xf32>
    %95 = math.exp %94 : vector<2x8x8xf32>
    %cst_14 = arith.constant dense<0.000000e+00> : vector<2x8xf32>
    %96 = vector.multi_reduction <add>, %95, %cst_14 [2] : vector<2x8x8xf32> to vector<2x8xf32>
    %97 = vector.shape_cast %96 : vector<2x8xf32> to vector<2x8x1xf32>
    %98 = vector.broadcast %97 : vector<2x8x1xf32> to vector<2x8x8xf32>
    %99 = arith.divf %95, %98 : vector<2x8x8xf32>
    "tpu.trace_start"() <{level = 10 : i32, message = "bqk,bkc->bqc"}> : () -> ()
    %cst_15 = arith.constant dense<0.000000e+00> : vector<2x8x8xf32>
    %100 = tpu.matmul %99, %17, %cst_15 {dimension_numbers = #tpu.dot_dimension_numbers<[2], [1], [1], [2], [0, 0, 0, 1, 1, 2], [0], [0]>} : vector<2x8x8xf32>, vector<2x8x8xf32>, vector<2x8x8xf32> -> vector<2x8x8xf32>
    "tpu.trace_stop"() : () -> ()
    %101 = vector.extract_strided_slice %8 {offsets = [0, 0, 8], sizes = [2, 8, 8], strides = [1, 1, 1]} : vector<2x8x32xf32> to vector<2x8x8xf32>
    %102 = vector.extract_strided_slice %9 {offsets = [0, 0, 8], sizes = [2, 8, 8], strides = [1, 1, 1]} : vector<2x8x32xf32> to vector<2x8x8xf32>
    %103 = vector.extract_strided_slice %10 {offsets = [0, 0, 8], sizes = [2, 8, 8], strides = [1, 1, 1]} : vector<2x8x32xf32> to vector<2x8x8xf32>
    "tpu.trace_start"() <{level = 10 : i32, message = "bqc,bkc->bqk"}> : () -> ()
    %cst_16 = arith.constant dense<0.000000e+00> : vector<2x8x8xf32>
    %104 = tpu.matmul %101, %102, %cst_16 {dimension_numbers = #tpu.dot_dimension_numbers<[2], [2], [1], [1], [0, 0, 0, 1, 1, 1], [0], [0]>} : vector<2x8x8xf32>, vector<2x8x8xf32>, vector<2x8x8xf32> -> vector<2x8x8xf32>
    "tpu.trace_stop"() : () -> ()
    %c1 = arith.constant 1 : index
    %c0_17 = arith.constant 0 : index
    %c0_18 = arith.constant 0 : index
    %c0_19 = arith.constant 0 : index
    %105 = vector.load %arg4[%c1, %c0_17, %c0_18, %c0_19] : memref<4x8x8x8xf32, #tpu.memory_space<vmem>>, vector<1x8x8x8xf32>
    %106 = vector.shape_cast %105 : vector<1x8x8x8xf32> to vector<8x8x8xf32>
    %107 = vector.extract_strided_slice %101 {offsets = [0, 0, 0], sizes = [2, 8, 1], strides = [1, 1, 1]} : vector<2x8x8xf32> to vector<2x8x1xf32>
    %108 = vector.extract_strided_slice %106 {offsets = [0, 0, 0], sizes = [1, 8, 8], strides = [1, 1, 1]} : vector<8x8x8xf32> to vector<1x8x8xf32>
    %109 = vector.shape_cast %108 : vector<1x8x8xf32> to vector<8x8xf32>
    %110 = vector.shape_cast %109 : vector<8x8xf32> to vector<1x8x8xf32>
    %111 = vector.broadcast %107 : vector<2x8x1xf32> to vector<2x8x8xf32>
    %112 = vector.broadcast %110 : vector<1x8x8xf32> to vector<2x8x8xf32>
    %113 = arith.mulf %111, %112 : vector<2x8x8xf32>
    %114 = arith.addf %104, %113 : vector<2x8x8xf32>
    %115 = vector.extract_strided_slice %101 {offsets = [0, 0, 1], sizes = [2, 8, 1], strides = [1, 1, 1]} : vector<2x8x8xf32> to vector<2x8x1xf32>
    %116 = vector.extract_strided_slice %106 {offsets = [1, 0, 0], sizes = [1, 8, 8], strides = [1, 1, 1]} : vector<8x8x8xf32> to vector<1x8x8xf32>
    %117 = vector.shape_cast %116 : vector<1x8x8xf32> to vector<8x8xf32>
    %118 = vector.shape_cast %117 : vector<8x8xf32> to vector<1x8x8xf32>
    %119 = vector.broadcast %115 : vector<2x8x1xf32> to vector<2x8x8xf32>
    %120 = vector.broadcast %118 : vector<1x8x8xf32> to vector<2x8x8xf32>
    %121 = arith.mulf %119, %120 : vector<2x8x8xf32>
    %122 = arith.addf %114, %121 : vector<2x8x8xf32>
    %123 = vector.extract_strided_slice %101 {offsets = [0, 0, 2], sizes = [2, 8, 1], strides = [1, 1, 1]} : vector<2x8x8xf32> to vector<2x8x1xf32>
    %124 = vector.extract_strided_slice %106 {offsets = [2, 0, 0], sizes = [1, 8, 8], strides = [1, 1, 1]} : vector<8x8x8xf32> to vector<1x8x8xf32>
    %125 = vector.shape_cast %124 : vector<1x8x8xf32> to vector<8x8xf32>
    %126 = vector.shape_cast %125 : vector<8x8xf32> to vector<1x8x8xf32>
    %127 = vector.broadcast %123 : vector<2x8x1xf32> to vector<2x8x8xf32>
    %128 = vector.broadcast %126 : vector<1x8x8xf32> to vector<2x8x8xf32>
    %129 = arith.mulf %127, %128 : vector<2x8x8xf32>
    %130 = arith.addf %122, %129 : vector<2x8x8xf32>
    %131 = vector.extract_strided_slice %101 {offsets = [0, 0, 3], sizes = [2, 8, 1], strides = [1, 1, 1]} : vector<2x8x8xf32> to vector<2x8x1xf32>
    %132 = vector.extract_strided_slice %106 {offsets = [3, 0, 0], sizes = [1, 8, 8], strides = [1, 1, 1]} : vector<8x8x8xf32> to vector<1x8x8xf32>
    %133 = vector.shape_cast %132 : vector<1x8x8xf32> to vector<8x8xf32>
    %134 = vector.shape_cast %133 : vector<8x8xf32> to vector<1x8x8xf32>
    %135 = vector.broadcast %131 : vector<2x8x1xf32> to vector<2x8x8xf32>
    %136 = vector.broadcast %134 : vector<1x8x8xf32> to vector<2x8x8xf32>
    %137 = arith.mulf %135, %136 : vector<2x8x8xf32>
    %138 = arith.addf %130, %137 : vector<2x8x8xf32>
    %139 = vector.extract_strided_slice %101 {offsets = [0, 0, 4], sizes = [2, 8, 1], strides = [1, 1, 1]} : vector<2x8x8xf32> to vector<2x8x1xf32>
    %140 = vector.extract_strided_slice %106 {offsets = [4, 0, 0], sizes = [1, 8, 8], strides = [1, 1, 1]} : vector<8x8x8xf32> to vector<1x8x8xf32>
    %141 = vector.shape_cast %140 : vector<1x8x8xf32> to vector<8x8xf32>
    %142 = vector.shape_cast %141 : vector<8x8xf32> to vector<1x8x8xf32>
    %143 = vector.broadcast %139 : vector<2x8x1xf32> to vector<2x8x8xf32>
    %144 = vector.broadcast %142 : vector<1x8x8xf32> to vector<2x8x8xf32>
    %145 = arith.mulf %143, %144 : vector<2x8x8xf32>
    %146 = arith.addf %138, %145 : vector<2x8x8xf32>
    %147 = vector.extract_strided_slice %101 {offsets = [0, 0, 5], sizes = [2, 8, 1], strides = [1, 1, 1]} : vector<2x8x8xf32> to vector<2x8x1xf32>
    %148 = vector.extract_strided_slice %106 {offsets = [5, 0, 0], sizes = [1, 8, 8], strides = [1, 1, 1]} : vector<8x8x8xf32> to vector<1x8x8xf32>
    %149 = vector.shape_cast %148 : vector<1x8x8xf32> to vector<8x8xf32>
    %150 = vector.shape_cast %149 : vector<8x8xf32> to vector<1x8x8xf32>
    %151 = vector.broadcast %147 : vector<2x8x1xf32> to vector<2x8x8xf32>
    %152 = vector.broadcast %150 : vector<1x8x8xf32> to vector<2x8x8xf32>
    %153 = arith.mulf %151, %152 : vector<2x8x8xf32>
    %154 = arith.addf %146, %153 : vector<2x8x8xf32>
    %155 = vector.extract_strided_slice %101 {offsets = [0, 0, 6], sizes = [2, 8, 1], strides = [1, 1, 1]} : vector<2x8x8xf32> to vector<2x8x1xf32>
    %156 = vector.extract_strided_slice %106 {offsets = [6, 0, 0], sizes = [1, 8, 8], strides = [1, 1, 1]} : vector<8x8x8xf32> to vector<1x8x8xf32>
    %157 = vector.shape_cast %156 : vector<1x8x8xf32> to vector<8x8xf32>
    %158 = vector.shape_cast %157 : vector<8x8xf32> to vector<1x8x8xf32>
    %159 = vector.broadcast %155 : vector<2x8x1xf32> to vector<2x8x8xf32>
    %160 = vector.broadcast %158 : vector<1x8x8xf32> to vector<2x8x8xf32>
    %161 = arith.mulf %159, %160 : vector<2x8x8xf32>
    %162 = arith.addf %154, %161 : vector<2x8x8xf32>
    %163 = vector.extract_strided_slice %101 {offsets = [0, 0, 7], sizes = [2, 8, 1], strides = [1, 1, 1]} : vector<2x8x8xf32> to vector<2x8x1xf32>
    %164 = vector.extract_strided_slice %106 {offsets = [7, 0, 0], sizes = [1, 8, 8], strides = [1, 1, 1]} : vector<8x8x8xf32> to vector<1x8x8xf32>
    %165 = vector.shape_cast %164 : vector<1x8x8xf32> to vector<8x8xf32>
    %166 = vector.shape_cast %165 : vector<8x8xf32> to vector<1x8x8xf32>
    %167 = vector.broadcast %163 : vector<2x8x1xf32> to vector<2x8x8xf32>
    %168 = vector.broadcast %166 : vector<1x8x8xf32> to vector<2x8x8xf32>
    %169 = arith.mulf %167, %168 : vector<2x8x8xf32>
    %170 = arith.addf %162, %169 : vector<2x8x8xf32>
    %cst_20 = arith.constant 0xFF800000 : f32
    %171 = vector.shape_cast %14 : vector<1x8x8xi1> to vector<1x8x8xi1>
    %172 = vector.broadcast %171 : vector<1x8x8xi1> to vector<2x8x8xi1>
    %173 = vector.broadcast %cst_20 : f32 to vector<2x8x8xf32>
    %174 = arith.select %172, %170, %173 : vector<2x8x8xi1>, vector<2x8x8xf32>
    %cst_21 = arith.constant dense<0xFF800000> : vector<2x8xf32>
    %175 = vector.multi_reduction <maximumf>, %174, %cst_21 [2] : vector<2x8x8xf32> to vector<2x8xf32>
    %cst_22 = arith.constant 0xFF800000 : f32
    %176 = vector.broadcast %cst_22 : f32 to vector<2x8xf32>
    %177 = arith.maximumf %176, %175 : vector<2x8xf32>
    %178 = vector.shape_cast %177 : vector<2x8xf32> to vector<2x8x1xf32>
    %179 = vector.broadcast %178 : vector<2x8x1xf32> to vector<2x8x8xf32>
    %180 = arith.subf %174, %179 : vector<2x8x8xf32>
    %181 = math.exp %180 : vector<2x8x8xf32>
    %cst_23 = arith.constant dense<0.000000e+00> : vector<2x8xf32>
    %182 = vector.multi_reduction <add>, %181, %cst_23 [2] : vector<2x8x8xf32> to vector<2x8xf32>
    %183 = vector.shape_cast %182 : vector<2x8xf32> to vector<2x8x1xf32>
    %184 = vector.broadcast %183 : vector<2x8x1xf32> to vector<2x8x8xf32>
    %185 = arith.divf %181, %184 : vector<2x8x8xf32>
    "tpu.trace_start"() <{level = 10 : i32, message = "bqk,bkc->bqc"}> : () -> ()
    %cst_24 = arith.constant dense<0.000000e+00> : vector<2x8x8xf32>
    %186 = tpu.matmul %185, %103, %cst_24 {dimension_numbers = #tpu.dot_dimension_numbers<[2], [1], [1], [2], [0, 0, 0, 1, 1, 2], [0], [0]>} : vector<2x8x8xf32>, vector<2x8x8xf32>, vector<2x8x8xf32> -> vector<2x8x8xf32>
    "tpu.trace_stop"() : () -> ()
    %187 = vector.extract_strided_slice %8 {offsets = [0, 0, 16], sizes = [2, 8, 8], strides = [1, 1, 1]} : vector<2x8x32xf32> to vector<2x8x8xf32>
    %188 = vector.extract_strided_slice %9 {offsets = [0, 0, 16], sizes = [2, 8, 8], strides = [1, 1, 1]} : vector<2x8x32xf32> to vector<2x8x8xf32>
    %189 = vector.extract_strided_slice %10 {offsets = [0, 0, 16], sizes = [2, 8, 8], strides = [1, 1, 1]} : vector<2x8x32xf32> to vector<2x8x8xf32>
    "tpu.trace_start"() <{level = 10 : i32, message = "bqc,bkc->bqk"}> : () -> ()
    %cst_25 = arith.constant dense<0.000000e+00> : vector<2x8x8xf32>
    %190 = tpu.matmul %187, %188, %cst_25 {dimension_numbers = #tpu.dot_dimension_numbers<[2], [2], [1], [1], [0, 0, 0, 1, 1, 1], [0], [0]>} : vector<2x8x8xf32>, vector<2x8x8xf32>, vector<2x8x8xf32> -> vector<2x8x8xf32>
    "tpu.trace_stop"() : () -> ()
    %c2 = arith.constant 2 : index
    %c0_26 = arith.constant 0 : index
    %c0_27 = arith.constant 0 : index
    %c0_28 = arith.constant 0 : index
    %191 = vector.load %arg4[%c2, %c0_26, %c0_27, %c0_28] : memref<4x8x8x8xf32, #tpu.memory_space<vmem>>, vector<1x8x8x8xf32>
    %192 = vector.shape_cast %191 : vector<1x8x8x8xf32> to vector<8x8x8xf32>
    %193 = vector.extract_strided_slice %187 {offsets = [0, 0, 0], sizes = [2, 8, 1], strides = [1, 1, 1]} : vector<2x8x8xf32> to vector<2x8x1xf32>
    %194 = vector.extract_strided_slice %192 {offsets = [0, 0, 0], sizes = [1, 8, 8], strides = [1, 1, 1]} : vector<8x8x8xf32> to vector<1x8x8xf32>
    %195 = vector.shape_cast %194 : vector<1x8x8xf32> to vector<8x8xf32>
    %196 = vector.shape_cast %195 : vector<8x8xf32> to vector<1x8x8xf32>
    %197 = vector.broadcast %193 : vector<2x8x1xf32> to vector<2x8x8xf32>
    %198 = vector.broadcast %196 : vector<1x8x8xf32> to vector<2x8x8xf32>
    %199 = arith.mulf %197, %198 : vector<2x8x8xf32>
    %200 = arith.addf %190, %199 : vector<2x8x8xf32>
    %201 = vector.extract_strided_slice %187 {offsets = [0, 0, 1], sizes = [2, 8, 1], strides = [1, 1, 1]} : vector<2x8x8xf32> to vector<2x8x1xf32>
    %202 = vector.extract_strided_slice %192 {offsets = [1, 0, 0], sizes = [1, 8, 8], strides = [1, 1, 1]} : vector<8x8x8xf32> to vector<1x8x8xf32>
    %203 = vector.shape_cast %202 : vector<1x8x8xf32> to vector<8x8xf32>
    %204 = vector.shape_cast %203 : vector<8x8xf32> to vector<1x8x8xf32>
    %205 = vector.broadcast %201 : vector<2x8x1xf32> to vector<2x8x8xf32>
    %206 = vector.broadcast %204 : vector<1x8x8xf32> to vector<2x8x8xf32>
    %207 = arith.mulf %205, %206 : vector<2x8x8xf32>
    %208 = arith.addf %200, %207 : vector<2x8x8xf32>
    %209 = vector.extract_strided_slice %187 {offsets = [0, 0, 2], sizes = [2, 8, 1], strides = [1, 1, 1]} : vector<2x8x8xf32> to vector<2x8x1xf32>
    %210 = vector.extract_strided_slice %192 {offsets = [2, 0, 0], sizes = [1, 8, 8], strides = [1, 1, 1]} : vector<8x8x8xf32> to vector<1x8x8xf32>
    %211 = vector.shape_cast %210 : vector<1x8x8xf32> to vector<8x8xf32>
    %212 = vector.shape_cast %211 : vector<8x8xf32> to vector<1x8x8xf32>
    %213 = vector.broadcast %209 : vector<2x8x1xf32> to vector<2x8x8xf32>
    %214 = vector.broadcast %212 : vector<1x8x8xf32> to vector<2x8x8xf32>
    %215 = arith.mulf %213, %214 : vector<2x8x8xf32>
    %216 = arith.addf %208, %215 : vector<2x8x8xf32>
    %217 = vector.extract_strided_slice %187 {offsets = [0, 0, 3], sizes = [2, 8, 1], strides = [1, 1, 1]} : vector<2x8x8xf32> to vector<2x8x1xf32>
    %218 = vector.extract_strided_slice %192 {offsets = [3, 0, 0], sizes = [1, 8, 8], strides = [1, 1, 1]} : vector<8x8x8xf32> to vector<1x8x8xf32>
    %219 = vector.shape_cast %218 : vector<1x8x8xf32> to vector<8x8xf32>
    %220 = vector.shape_cast %219 : vector<8x8xf32> to vector<1x8x8xf32>
    %221 = vector.broadcast %217 : vector<2x8x1xf32> to vector<2x8x8xf32>
    %222 = vector.broadcast %220 : vector<1x8x8xf32> to vector<2x8x8xf32>
    %223 = arith.mulf %221, %222 : vector<2x8x8xf32>
    %224 = arith.addf %216, %223 : vector<2x8x8xf32>
    %225 = vector.extract_strided_slice %187 {offsets = [0, 0, 4], sizes = [2, 8, 1], strides = [1, 1, 1]} : vector<2x8x8xf32> to vector<2x8x1xf32>
    %226 = vector.extract_strided_slice %192 {offsets = [4, 0, 0], sizes = [1, 8, 8], strides = [1, 1, 1]} : vector<8x8x8xf32> to vector<1x8x8xf32>
    %227 = vector.shape_cast %226 : vector<1x8x8xf32> to vector<8x8xf32>
    %228 = vector.shape_cast %227 : vector<8x8xf32> to vector<1x8x8xf32>
    %229 = vector.broadcast %225 : vector<2x8x1xf32> to vector<2x8x8xf32>
    %230 = vector.broadcast %228 : vector<1x8x8xf32> to vector<2x8x8xf32>
    %231 = arith.mulf %229, %230 : vector<2x8x8xf32>
    %232 = arith.addf %224, %231 : vector<2x8x8xf32>
    %233 = vector.extract_strided_slice %187 {offsets = [0, 0, 5], sizes = [2, 8, 1], strides = [1, 1, 1]} : vector<2x8x8xf32> to vector<2x8x1xf32>
    %234 = vector.extract_strided_slice %192 {offsets = [5, 0, 0], sizes = [1, 8, 8], strides = [1, 1, 1]} : vector<8x8x8xf32> to vector<1x8x8xf32>
    %235 = vector.shape_cast %234 : vector<1x8x8xf32> to vector<8x8xf32>
    %236 = vector.shape_cast %235 : vector<8x8xf32> to vector<1x8x8xf32>
    %237 = vector.broadcast %233 : vector<2x8x1xf32> to vector<2x8x8xf32>
    %238 = vector.broadcast %236 : vector<1x8x8xf32> to vector<2x8x8xf32>
    %239 = arith.mulf %237, %238 : vector<2x8x8xf32>
    %240 = arith.addf %232, %239 : vector<2x8x8xf32>
    %241 = vector.extract_strided_slice %187 {offsets = [0, 0, 6], sizes = [2, 8, 1], strides = [1, 1, 1]} : vector<2x8x8xf32> to vector<2x8x1xf32>
    %242 = vector.extract_strided_slice %192 {offsets = [6, 0, 0], sizes = [1, 8, 8], strides = [1, 1, 1]} : vector<8x8x8xf32> to vector<1x8x8xf32>
    %243 = vector.shape_cast %242 : vector<1x8x8xf32> to vector<8x8xf32>
    %244 = vector.shape_cast %243 : vector<8x8xf32> to vector<1x8x8xf32>
    %245 = vector.broadcast %241 : vector<2x8x1xf32> to vector<2x8x8xf32>
    %246 = vector.broadcast %244 : vector<1x8x8xf32> to vector<2x8x8xf32>
    %247 = arith.mulf %245, %246 : vector<2x8x8xf32>
    %248 = arith.addf %240, %247 : vector<2x8x8xf32>
    %249 = vector.extract_strided_slice %187 {offsets = [0, 0, 7], sizes = [2, 8, 1], strides = [1, 1, 1]} : vector<2x8x8xf32> to vector<2x8x1xf32>
    %250 = vector.extract_strided_slice %192 {offsets = [7, 0, 0], sizes = [1, 8, 8], strides = [1, 1, 1]} : vector<8x8x8xf32> to vector<1x8x8xf32>
    %251 = vector.shape_cast %250 : vector<1x8x8xf32> to vector<8x8xf32>
    %252 = vector.shape_cast %251 : vector<8x8xf32> to vector<1x8x8xf32>
    %253 = vector.broadcast %249 : vector<2x8x1xf32> to vector<2x8x8xf32>
    %254 = vector.broadcast %252 : vector<1x8x8xf32> to vector<2x8x8xf32>
    %255 = arith.mulf %253, %254 : vector<2x8x8xf32>
    %256 = arith.addf %248, %255 : vector<2x8x8xf32>
    %cst_29 = arith.constant 0xFF800000 : f32
    %257 = vector.shape_cast %14 : vector<1x8x8xi1> to vector<1x8x8xi1>
    %258 = vector.broadcast %257 : vector<1x8x8xi1> to vector<2x8x8xi1>
    %259 = vector.broadcast %cst_29 : f32 to vector<2x8x8xf32>
    %260 = arith.select %258, %256, %259 : vector<2x8x8xi1>, vector<2x8x8xf32>
    %cst_30 = arith.constant dense<0xFF800000> : vector<2x8xf32>
    %261 = vector.multi_reduction <maximumf>, %260, %cst_30 [2] : vector<2x8x8xf32> to vector<2x8xf32>
    %cst_31 = arith.constant 0xFF800000 : f32
    %262 = vector.broadcast %cst_31 : f32 to vector<2x8xf32>
    %263 = arith.maximumf %262, %261 : vector<2x8xf32>
    %264 = vector.shape_cast %263 : vector<2x8xf32> to vector<2x8x1xf32>
    %265 = vector.broadcast %264 : vector<2x8x1xf32> to vector<2x8x8xf32>
    %266 = arith.subf %260, %265 : vector<2x8x8xf32>
    %267 = math.exp %266 : vector<2x8x8xf32>
    %cst_32 = arith.constant dense<0.000000e+00> : vector<2x8xf32>
    %268 = vector.multi_reduction <add>, %267, %cst_32 [2] : vector<2x8x8xf32> to vector<2x8xf32>
    %269 = vector.shape_cast %268 : vector<2x8xf32> to vector<2x8x1xf32>
    %270 = vector.broadcast %269 : vector<2x8x1xf32> to vector<2x8x8xf32>
    %271 = arith.divf %267, %270 : vector<2x8x8xf32>
    "tpu.trace_start"() <{level = 10 : i32, message = "bqk,bkc->bqc"}> : () -> ()
    %cst_33 = arith.constant dense<0.000000e+00> : vector<2x8x8xf32>
    %272 = tpu.matmul %271, %189, %cst_33 {dimension_numbers = #tpu.dot_dimension_numbers<[2], [1], [1], [2], [0, 0, 0, 1, 1, 2], [0], [0]>} : vector<2x8x8xf32>, vector<2x8x8xf32>, vector<2x8x8xf32> -> vector<2x8x8xf32>
    "tpu.trace_stop"() : () -> ()
    %273 = vector.extract_strided_slice %8 {offsets = [0, 0, 24], sizes = [2, 8, 8], strides = [1, 1, 1]} : vector<2x8x32xf32> to vector<2x8x8xf32>
    %274 = vector.extract_strided_slice %9 {offsets = [0, 0, 24], sizes = [2, 8, 8], strides = [1, 1, 1]} : vector<2x8x32xf32> to vector<2x8x8xf32>
    %275 = vector.extract_strided_slice %10 {offsets = [0, 0, 24], sizes = [2, 8, 8], strides = [1, 1, 1]} : vector<2x8x32xf32> to vector<2x8x8xf32>
    "tpu.trace_start"() <{level = 10 : i32, message = "bqc,bkc->bqk"}> : () -> ()
    %cst_34 = arith.constant dense<0.000000e+00> : vector<2x8x8xf32>
    %276 = tpu.matmul %273, %274, %cst_34 {dimension_numbers = #tpu.dot_dimension_numbers<[2], [2], [1], [1], [0, 0, 0, 1, 1, 1], [0], [0]>} : vector<2x8x8xf32>, vector<2x8x8xf32>, vector<2x8x8xf32> -> vector<2x8x8xf32>
    "tpu.trace_stop"() : () -> ()
    %c3 = arith.constant 3 : index
    %c0_35 = arith.constant 0 : index
    %c0_36 = arith.constant 0 : index
    %c0_37 = arith.constant 0 : index
    %277 = vector.load %arg4[%c3, %c0_35, %c0_36, %c0_37] : memref<4x8x8x8xf32, #tpu.memory_space<vmem>>, vector<1x8x8x8xf32>
    %278 = vector.shape_cast %277 : vector<1x8x8x8xf32> to vector<8x8x8xf32>
    %279 = vector.extract_strided_slice %273 {offsets = [0, 0, 0], sizes = [2, 8, 1], strides = [1, 1, 1]} : vector<2x8x8xf32> to vector<2x8x1xf32>
    %280 = vector.extract_strided_slice %278 {offsets = [0, 0, 0], sizes = [1, 8, 8], strides = [1, 1, 1]} : vector<8x8x8xf32> to vector<1x8x8xf32>
    %281 = vector.shape_cast %280 : vector<1x8x8xf32> to vector<8x8xf32>
    %282 = vector.shape_cast %281 : vector<8x8xf32> to vector<1x8x8xf32>
    %283 = vector.broadcast %279 : vector<2x8x1xf32> to vector<2x8x8xf32>
    %284 = vector.broadcast %282 : vector<1x8x8xf32> to vector<2x8x8xf32>
    %285 = arith.mulf %283, %284 : vector<2x8x8xf32>
    %286 = arith.addf %276, %285 : vector<2x8x8xf32>
    %287 = vector.extract_strided_slice %273 {offsets = [0, 0, 1], sizes = [2, 8, 1], strides = [1, 1, 1]} : vector<2x8x8xf32> to vector<2x8x1xf32>
    %288 = vector.extract_strided_slice %278 {offsets = [1, 0, 0], sizes = [1, 8, 8], strides = [1, 1, 1]} : vector<8x8x8xf32> to vector<1x8x8xf32>
    %289 = vector.shape_cast %288 : vector<1x8x8xf32> to vector<8x8xf32>
    %290 = vector.shape_cast %289 : vector<8x8xf32> to vector<1x8x8xf32>
    %291 = vector.broadcast %287 : vector<2x8x1xf32> to vector<2x8x8xf32>
    %292 = vector.broadcast %290 : vector<1x8x8xf32> to vector<2x8x8xf32>
    %293 = arith.mulf %291, %292 : vector<2x8x8xf32>
    %294 = arith.addf %286, %293 : vector<2x8x8xf32>
    %295 = vector.extract_strided_slice %273 {offsets = [0, 0, 2], sizes = [2, 8, 1], strides = [1, 1, 1]} : vector<2x8x8xf32> to vector<2x8x1xf32>
    %296 = vector.extract_strided_slice %278 {offsets = [2, 0, 0], sizes = [1, 8, 8], strides = [1, 1, 1]} : vector<8x8x8xf32> to vector<1x8x8xf32>
    %297 = vector.shape_cast %296 : vector<1x8x8xf32> to vector<8x8xf32>
    %298 = vector.shape_cast %297 : vector<8x8xf32> to vector<1x8x8xf32>
    %299 = vector.broadcast %295 : vector<2x8x1xf32> to vector<2x8x8xf32>
    %300 = vector.broadcast %298 : vector<1x8x8xf32> to vector<2x8x8xf32>
    %301 = arith.mulf %299, %300 : vector<2x8x8xf32>
    %302 = arith.addf %294, %301 : vector<2x8x8xf32>
    %303 = vector.extract_strided_slice %273 {offsets = [0, 0, 3], sizes = [2, 8, 1], strides = [1, 1, 1]} : vector<2x8x8xf32> to vector<2x8x1xf32>
    %304 = vector.extract_strided_slice %278 {offsets = [3, 0, 0], sizes = [1, 8, 8], strides = [1, 1, 1]} : vector<8x8x8xf32> to vector<1x8x8xf32>
    %305 = vector.shape_cast %304 : vector<1x8x8xf32> to vector<8x8xf32>
    %306 = vector.shape_cast %305 : vector<8x8xf32> to vector<1x8x8xf32>
    %307 = vector.broadcast %303 : vector<2x8x1xf32> to vector<2x8x8xf32>
    %308 = vector.broadcast %306 : vector<1x8x8xf32> to vector<2x8x8xf32>
    %309 = arith.mulf %307, %308 : vector<2x8x8xf32>
    %310 = arith.addf %302, %309 : vector<2x8x8xf32>
    %311 = vector.extract_strided_slice %273 {offsets = [0, 0, 4], sizes = [2, 8, 1], strides = [1, 1, 1]} : vector<2x8x8xf32> to vector<2x8x1xf32>
    %312 = vector.extract_strided_slice %278 {offsets = [4, 0, 0], sizes = [1, 8, 8], strides = [1, 1, 1]} : vector<8x8x8xf32> to vector<1x8x8xf32>
    %313 = vector.shape_cast %312 : vector<1x8x8xf32> to vector<8x8xf32>
    %314 = vector.shape_cast %313 : vector<8x8xf32> to vector<1x8x8xf32>
    %315 = vector.broadcast %311 : vector<2x8x1xf32> to vector<2x8x8xf32>
    %316 = vector.broadcast %314 : vector<1x8x8xf32> to vector<2x8x8xf32>
    %317 = arith.mulf %315, %316 : vector<2x8x8xf32>
    %318 = arith.addf %310, %317 : vector<2x8x8xf32>
    %319 = vector.extract_strided_slice %273 {offsets = [0, 0, 5], sizes = [2, 8, 1], strides = [1, 1, 1]} : vector<2x8x8xf32> to vector<2x8x1xf32>
    %320 = vector.extract_strided_slice %278 {offsets = [5, 0, 0], sizes = [1, 8, 8], strides = [1, 1, 1]} : vector<8x8x8xf32> to vector<1x8x8xf32>
    %321 = vector.shape_cast %320 : vector<1x8x8xf32> to vector<8x8xf32>
    %322 = vector.shape_cast %321 : vector<8x8xf32> to vector<1x8x8xf32>
    %323 = vector.broadcast %319 : vector<2x8x1xf32> to vector<2x8x8xf32>
    %324 = vector.broadcast %322 : vector<1x8x8xf32> to vector<2x8x8xf32>
    %325 = arith.mulf %323, %324 : vector<2x8x8xf32>
    %326 = arith.addf %318, %325 : vector<2x8x8xf32>
    %327 = vector.extract_strided_slice %273 {offsets = [0, 0, 6], sizes = [2, 8, 1], strides = [1, 1, 1]} : vector<2x8x8xf32> to vector<2x8x1xf32>
    %328 = vector.extract_strided_slice %278 {offsets = [6, 0, 0], sizes = [1, 8, 8], strides = [1, 1, 1]} : vector<8x8x8xf32> to vector<1x8x8xf32>
    %329 = vector.shape_cast %328 : vector<1x8x8xf32> to vector<8x8xf32>
    %330 = vector.shape_cast %329 : vector<8x8xf32> to vector<1x8x8xf32>
    %331 = vector.broadcast %327 : vector<2x8x1xf32> to vector<2x8x8xf32>
    %332 = vector.broadcast %330 : vector<1x8x8xf32> to vector<2x8x8xf32>
    %333 = arith.mulf %331, %332 : vector<2x8x8xf32>
    %334 = arith.addf %326, %333 : vector<2x8x8xf32>
    %335 = vector.extract_strided_slice %273 {offsets = [0, 0, 7], sizes = [2, 8, 1], strides = [1, 1, 1]} : vector<2x8x8xf32> to vector<2x8x1xf32>
    %336 = vector.extract_strided_slice %278 {offsets = [7, 0, 0], sizes = [1, 8, 8], strides = [1, 1, 1]} : vector<8x8x8xf32> to vector<1x8x8xf32>
    %337 = vector.shape_cast %336 : vector<1x8x8xf32> to vector<8x8xf32>
    %338 = vector.shape_cast %337 : vector<8x8xf32> to vector<1x8x8xf32>
    %339 = vector.broadcast %335 : vector<2x8x1xf32> to vector<2x8x8xf32>
    %340 = vector.broadcast %338 : vector<1x8x8xf32> to vector<2x8x8xf32>
    %341 = arith.mulf %339, %340 : vector<2x8x8xf32>
    %342 = arith.addf %334, %341 : vector<2x8x8xf32>
    %cst_38 = arith.constant 0xFF800000 : f32
    %343 = vector.shape_cast %14 : vector<1x8x8xi1> to vector<1x8x8xi1>
    %344 = vector.broadcast %343 : vector<1x8x8xi1> to vector<2x8x8xi1>
    %345 = vector.broadcast %cst_38 : f32 to vector<2x8x8xf32>
    %346 = arith.select %344, %342, %345 : vector<2x8x8xi1>, vector<2x8x8xf32>
    %cst_39 = arith.constant dense<0xFF800000> : vector<2x8xf32>
    %347 = vector.multi_reduction <maximumf>, %346, %cst_39 [2] : vector<2x8x8xf32> to vector<2x8xf32>
    %cst_40 = arith.constant 0xFF800000 : f32
    %348 = vector.broadcast %cst_40 : f32 to vector<2x8xf32>
    %349 = arith.maximumf %348, %347 : vector<2x8xf32>
    %350 = vector.shape_cast %349 : vector<2x8xf32> to vector<2x8x1xf32>
    %351 = vector.broadcast %350 : vector<2x8x1xf32> to vector<2x8x8xf32>
    %352 = arith.subf %346, %351 : vector<2x8x8xf32>
    %353 = math.exp %352 : vector<2x8x8xf32>
    %cst_41 = arith.constant dense<0.000000e+00> : vector<2x8xf32>
    %354 = vector.multi_reduction <add>, %353, %cst_41 [2] : vector<2x8x8xf32> to vector<2x8xf32>
    %355 = vector.shape_cast %354 : vector<2x8xf32> to vector<2x8x1xf32>
    %356 = vector.broadcast %355 : vector<2x8x1xf32> to vector<2x8x8xf32>
    %357 = arith.divf %353, %356 : vector<2x8x8xf32>
    "tpu.trace_start"() <{level = 10 : i32, message = "bqk,bkc->bqc"}> : () -> ()
    %cst_42 = arith.constant dense<0.000000e+00> : vector<2x8x8xf32>
    %358 = tpu.matmul %357, %275, %cst_42 {dimension_numbers = #tpu.dot_dimension_numbers<[2], [1], [1], [2], [0, 0, 0, 1, 1, 2], [0], [0]>} : vector<2x8x8xf32>, vector<2x8x8xf32>, vector<2x8x8xf32> -> vector<2x8x8xf32>
    "tpu.trace_stop"() : () -> ()
    %359 = tpu.concatenate %100, %186, %272, %358 in 2 : vector<2x8x8xf32>, vector<2x8x8xf32>, vector<2x8x8xf32>, vector<2x8x8xf32> -> vector<2x8x32xf32>
    %360 = vector.shape_cast %359 : vector<2x8x32xf32> to vector<16x32xf32>
    %c0_43 = arith.constant 0 : index
    %c0_44 = arith.constant 0 : index
    %361 = vector.load %arg5[%c0_43, %c0_44] : memref<32x128xf32, #tpu.memory_space<vmem>>, vector<32x128xf32>
    %cst_45 = arith.constant dense<0.000000e+00> : vector<16x128xf32>
    %362 = tpu.matmul %360, %361, %cst_45 {dimension_numbers = #tpu.dot_dimension_numbers<[1], [0], [0], [1], [0, 0, 1, 1], [], []>} : vector<16x32xf32>, vector<32x128xf32>, vector<16x128xf32> -> vector<16x128xf32>
    %c0_46 = arith.constant 0 : index
    %c0_47 = arith.constant 0 : index
    %363 = vector.load %arg6[%c0_46, %c0_47] : memref<1x128xf32, #tpu.memory_space<vmem>>, vector<1x128xf32>
    %364 = vector.broadcast %363 : vector<1x128xf32> to vector<16x128xf32>
    %365 = arith.addf %362, %364 : vector<16x128xf32>
    %c0_48 = arith.constant 0 : index
    %c0_49 = arith.constant 0 : index
    %366 = vector.load %arg7[%c0_48, %c0_49] : memref<16x128xf32, #tpu.memory_space<vmem>>, vector<16x128xf32>
    tpu.vector_store %arg7[%c0_48, %c0_49], %365 {strides = array<i32>} : memref<16x128xf32, #tpu.memory_space<vmem>>, vector<16x128xf32>,
    return
  }
  func.func @transform_0(%arg0: i32) -> (i32, i32, i32) {
    %c0_i32 = arith.constant 0 : i32
    %c0_i32_0 = arith.constant 0 : i32
    %c0_i32_1 = arith.constant 0 : i32
    return %arg0, %c0_i32, %c0_i32_0 : i32, i32, i32
  }
  func.func @transform_1(%arg0: i32) -> (i32, i32) {
    %c0_i32 = arith.constant 0 : i32
    %c0_i32_0 = arith.constant 0 : i32
    %c0_i32_1 = arith.constant 0 : i32
    return %c0_i32, %c0_i32_0 : i32, i32
  }
  func.func @transform_2(%arg0: i32) -> (i32, i32) {
    %c0_i32 = arith.constant 0 : i32
    %c0_i32_0 = arith.constant 0 : i32
    %c0_i32_1 = arith.constant 0 : i32
    return %c0_i32, %c0_i32_0 : i32, i32
  }
  func.func @transform_3(%arg0: i32) -> (i32, i32, i32, i32) {
    %c0_i32 = arith.constant 0 : i32
    %c0_i32_0 = arith.constant 0 : i32
    %c0_i32_1 = arith.constant 0 : i32
    %c0_i32_2 = arith.constant 0 : i32
    %c0_i32_3 = arith.constant 0 : i32
    return %c0_i32, %c0_i32_0, %c0_i32_1, %c0_i32_2 : i32, i32, i32, i32
  }
  func.func @transform_4(%arg0: i32) -> (i32, i32) {
    %c0_i32 = arith.constant 0 : i32
    %c0_i32_0 = arith.constant 0 : i32
    %c0_i32_1 = arith.constant 0 : i32
    return %c0_i32, %c0_i32_0 : i32, i32
  }
  func.func @transform_5(%arg0: i32) -> (i32, i32) {
    %c0_i32 = arith.constant 0 : i32
    %c0_i32_0 = arith.constant 0 : i32
    %c0_i32_1 = arith.constant 0 : i32
    return %c0_i32, %c0_i32_0 : i32, i32
  }
  func.func @transform_6(%arg0: i32) -> (i32, i32) {
    %c0_i32 = arith.constant 0 : i32
    %c0_i32_0 = arith.constant 0 : i32
    return %arg0, %c0_i32 : i32, i32
  }
}

</mosaic_0001>

<bundles_post_ra>
// kernel: tpu_custom_call.1
= control target key start
LH: loop header
LB: loop body
LE: loop exit
PB: predicated region body
PF: predicated region fallthrough
CT: control target
= control target key end

     0   :  { %11 = vsyncpa [#allocation3], 0  ;;  %s2170_s0 = inlined_call_operand.hbm [shape: f32[2,8,32], index: 0, kind: input, shape index: {}]   ;;  %s2171_s1 = inlined_call_operand.hbm [shape: f32[32,96], index: 1, kind: input, shape index: {}]   ;;  %s2172_s2 = inlined_call_operand.vmem [shape: f32[1,96], index: 2, kind: input, shape index: {}]   ;;  %s2173_s3 = inlined_call_operand.hbm [shape: f32[4,8,8,8], index: 3, kind: input, shape index: {}]   ;;  %s2174_s4 = inlined_call_operand.hbm [shape: f32[32,128], index: 4, kind: input, shape index: {}]   ;;  %s2175_s5 = inlined_call_operand.vmem [shape: f32[1,128], index: 5, kind: input, shape index: {}]   ;;  %s2176_s6 = inlined_call_operand.hbm [shape: f32[16,128], index: 6, kind: output, shape index: {}]  }
   0x1   :  { %12 = vsyncpa [#allocation6], 0 }
   0x2   :  { %13 = vsyncpa [#allocation9], 0 }
   0x3   :  { %14 = vsyncpa [#allocation4], 0  ;;  %s32_s23 = sshll.u32 %s2171_s1, 4  ;;  %s1579_s24 = smov [#allocation5]   ;;  %s33_s23 = int_to_ptr.hbm [resolvable:$true] %s32_s23 }
   0x4   :  { %s34_s25 = sshll.u32 %s1579_s24, 4  ;;  %s19_s28 = sshll.u32 %s2170_s0, 4  ;;  %s35_s25 = int_to_ptr.vmem [resolvable:$true] %s34_s25  ;;  %s20_s28 = int_to_ptr.hbm [resolvable:$true] %s19_s28 }
   0x5   :  { %s1580_s29 = smov 128   ;;  %s1581_s30 = smov 8  }
   0x6   :  { %40 = dma.hbm_to_vmem [thread:$0]  %s33_s23, 512, %s35_s25, [#allocation6], %s1580_s29, %s1580_s29, %s1581_s30  }
   0x7   :  { %s1582_s7 = smov [#allocation2]   ;;  %s47_s1 = sshll.u32 %s2173_s3, 4  ;;  %s48_s1 = int_to_ptr.hbm [resolvable:$true] %s47_s1 }
   0x8   :  { %s21_s8 = sshll.u32 %s1582_s7, 4  ;;  %s60_s12 = sshll.u32 %s2174_s4, 4  ;;  %s22_s8 = int_to_ptr.vmem [resolvable:$true] %s21_s8  ;;  %s61_s12 = int_to_ptr.hbm [resolvable:$true] %s60_s12 }
   0x9   :  { %27 = dma.hbm_to_vmem [thread:$0]  %s20_s28, 256, %s22_s8, [#allocation3], %s1580_s29, %s1580_s29, %s1581_s30  }
   0xa   :  { %s1583_s13 = smov [#allocation7]   ;;  %s1584_s15 = smov [#allocation8]  }
   0xb   :  { %s49_s14 = sshll.u32 %s1583_s13, 4  ;;  %s62_s3 = sshll.u32 %s1584_s15, 4  ;;  %s50_s14 = int_to_ptr.vmem [resolvable:$true] %s49_s14  ;;  %s63_s3 = int_to_ptr.vmem [resolvable:$true] %s62_s3 }
   0xc   :  { %55 = dma.hbm_to_vmem [thread:$0]  %s48_s1, 4096, %s50_s14, [#allocation6], %s1580_s29, %s1580_s29, %s1581_s30  }
   0xd   :  { %68 = dma.hbm_to_vmem [thread:$0]  %s61_s12, 512, %s63_s3, [#allocation9], %s1580_s29, %s1580_s29, %s1581_s30  }
   0xe   :  { %1571 = dma.done.wait [#allocation3], 256  }
   0xf   :  { %1572 = vsyncadd [#allocation3], 4294967040 }
  0x10   :  { %1573 = dma.done.wait [#allocation6], 4608  }
  0x11   :  { %1574 = vsyncadd [#allocation6], 4294962688 }
  0x12   :  { %1575 = dma.done.wait [#allocation9], 512  }
  0x13   :  { %1576 = vsyncadd [#allocation9], 4294966784  ;;  %v92_v0 = vld [vmem:[#allocation5 + $0x18] sm:$0xff]  ;;  %v91_v1 = vld [vmem:[#allocation5 + $0x10] sm:$0xff]  ;;  %vm97_vm0 = vcmask 261120   ;;  %v1585_v6 = vmov 1  }
  0x14   :  { %116 = vmatpush.msra.mxu0 %v92_v0  ;;  %v90_v2 = vld [vmem:[#allocation5 + $0x8] sm:$0xff]  ;;  %v89_v3 = vld [vmem:[#allocation5] sm:$0xff]  ;;  %v87_v4 = vld [vmem:[#allocation2] sm:$0xff]  ;;  %1349 = vset.pattern.permute.xlu1 %v1585_v6  ;;  %v1586_v7 = vmov 7   ;;  %v1587_v8 = vmov 0   ;;  %s1588_s17 = smov 112  }
  0x15   :  { %v88_v5 = vld [vmem:[#allocation2 + $0x8] sm:$0xff]  ;;  %1355 = vset.pattern.permute.xlu0 %v1586_v7  ;;  %1348 = vset.pattern.permute.xlu2 %v1587_v8  ;;  %v1417_v9 = vld [vmem:[%s2172_s2] ss:$0 sm:$0xff]  ;;  %s1589_s18 = smov 88   ;;  %s1590_s19 = smov 96   ;;  %v1593_v12 = vmov 3  }
  0x16   :  { %117 = vmatpush.msra.mxu0 %v91_v1  ;;  %s1591_s20 = smov 80   ;;  %s1592_s2 = smov 120   ;;  %v1596_v13 = vmov 5   ;;  %v1597_v14 = vmov 2   ;;  %v1598_v15 = vmov 16   ;;  %v1599_v16 = vmov 6  }
  0x17   :  { %s1594_s21 = smov 72   ;;  %s1595_s22 = smov 104   ;;  %v1600_v17 = vmov 4   ;;  %v1601_v18 = vmov 24   ;;  %v1602_v19 = vmov 10   ;;  %v1603_v22 = vmov 8  }
  0x18   :  { %118 = vmatpush.msra.mxu0 %v90_v2  ;;  %v1604_v23 = vmov 11   ;;  %v1605_v24 = vmov 9   ;;  %v1606_v25 = vmov 13   ;;  %v1607_v26 = vmov 12   ;;  %s1624_s23 = smov 64   ;;  %s1625_s24 = smov 56  }
  0x19   :  { %v1608_v27 = vmov 14   ;;  %v1609_v28 = vmov 17   ;;  %v1610_v29 = vmov 15   ;;  %v1611_v30 = vmov 18   ;;  %s1626_s25 = smov 48   ;;  %s1627_s26 = smov 40  }
  0x1a   :  { %119 = vmatpush.msra.mxu0 %v89_v3  ;;  %v1612_v31 = vmov 25   ;;  %v1613_v33 = vmov 19   ;;  %v1614_v35 = vmov 27   ;;  %v1615_v36 = vmov 20   ;;  %s1628_s27 = smov 16   ;;  %s1629_s28 = smov 24  }
  0x1b   :  { %1268 = vmatmul.msk.f32.vlgmr.msra.gmra.mxu0 %vm97_vm0, %v87_v4  ;;  %v1616_v38 = vmov 21   ;;  %vm154_vm1 = vcmask 64512   ;;  %v1617_v45 = vmov 22   ;;  %v1618_v51 = vmov 29   ;;  %s1630_s9 = smov [#allocation10]   ;;  %s1253_s11 = sshll.u32 %s2176_s6, 4  ;;  %s1254_s11 = int_to_ptr.hbm [resolvable:$true] %s1253_s11 }
  0x1c   :  { %v1619_v58 = vmov 26   ;;  %v1620_v62 = vmov 23   ;;  %v1621_v2 = vmov 31   ;;  %v1622_v4 = vmov 28   ;;  %s1251_s10 = sshll.u32 %s1630_s9, 4  ;;  %s1252_s10 = int_to_ptr.vmem [resolvable:$true] %s1251_s10 }
  0x23   :  { %1269 = vmatmul.msk.f32.gmra.mxu0 %vm97_vm0, %v88_v5 }
  0x98   :  { %v121_v10 = vpop.f32.mrf.mxu0 }
  0x99   :  { %v1697_v11 = vadd.f32 %v1417_v9, %v121_v10 }
  0x9b   :  { %673 = vrot.lane.b32.xlu1 %v1697_v11, %s1588_s17  ;;  %414 = vrot.lane.b32.xlu2 %v1697_v11, %s1589_s18 }
  0x9c   :  { %152 = vrot.lane.b32.xlu0 %v1697_v11, %s1590_s19 }
  0xa0   :  { %v124_v20 = vpop.f32.mrf.mxu0 }
  0xa1   :  { %v1730_v21 = vadd.f32 %v1417_v9, %v124_v20  ;;  %v1623_v9 = vmov 30   ;;  %v1911_v20 = vld [vmem:[#allocation7 + $0x8] sm:$0xff] }
  0xa3   :  { %206 = vperm.xlu1 %1349, %v1697_v11   ;;  %675 = vrot.lane.b32.xlu2 %v1697_v11, %s1591_s20 }
  0xa4   :  { %412 = vrot.lane.b32.xlu0 %v1697_v11, %s1592_s2 }
  0xab   :  { %1351 = vset.pattern.permute.xlu1 %v1593_v12  ;;  %936 = vrot.lane.b32.xlu2 %v1697_v11, %s1594_s21 }
  0xac   :  { %934 = vrot.lane.b32.xlu0 %v1697_v11, %s1595_s22  ;;  %230 = vperm.xlu1 %1351, %v1697_v11  }
  0xb3   :  { %142 = vperm.xlu2 %1348, %v1697_v11  }
  0xb4   :  { %278 = vperm.xlu0 %1355, %v1697_v11   ;;  %1353 = vset.pattern.permute.xlu1 %v1596_v13 }
  0xb5   :  { %254 = vperm.xlu1 %1353, %v1697_v11  }
  0xbb   :  { %1350 = vset.pattern.permute.xlu2 %v1597_v14 }
  0xbc   :  { %1361 = vset.pattern.permute.xlu0 %v1598_v15  ;;  %218 = vperm.xlu2 %1350, %v1697_v11  }
  0xbd   :  { %664 = vperm.xlu0 %1361, %v1697_v11   ;;  %1354 = vset.pattern.permute.xlu1 %v1599_v16 }
  0xbe   :  { %266 = vperm.xlu1 %1354, %v1697_v11  }
  0xc4   :  { %1352 = vset.pattern.permute.xlu2 %v1600_v17 }
  0xc5   :  { %1369 = vset.pattern.permute.xlu0 %v1601_v18  ;;  %242 = vperm.xlu2 %1352, %v1697_v11  }
  0xc6   :  { %925 = vperm.xlu0 %1369, %v1697_v11   ;;  %1358 = vset.pattern.permute.xlu1 %v1602_v19 }
  0xc7   :  { %481 = vperm.xlu1 %1358, %v1697_v11  }
  0xcd   :  { %1356 = vset.pattern.permute.xlu2 %v1603_v22 }
  0xce   :  { %179 = vrot.lane.b32.xlu0 %v1730_v21, %s1590_s19  ;;  %403 = vperm.xlu2 %1356, %v1697_v11  }
  0xcf   :  { %1359 = vset.pattern.permute.xlu1 %v1604_v23  ;;  %1372 = vset.pattern.permute.xlu0 %v1587_v8 }
  0xd0   :  { %493 = vperm.xlu1 %1359, %v1697_v11  }
  0xd6   :  { %964 = vrot.lane.b32.xlu0 %v1730_v21, %s1594_s21  ;;  %1357 = vset.pattern.permute.xlu2 %v1605_v24 }
  0xd7   :  { %469 = vperm.xlu2 %1357, %v1697_v11  }
  0xd8   :  { %1362 = vset.pattern.permute.xlu1 %v1606_v25 }
  0xd9   :  { %517 = vperm.xlu1 %1362, %v1697_v11  }
  0xde   :  { %147 = vperm.xlu0 %1372, %v1730_v21  }
  0xdf   :  { %1360 = vset.pattern.permute.xlu2 %v1607_v26 }
  0xe0   :  { %505 = vperm.xlu2 %1360, %v1697_v11  }
  0xe1   :  { %1364 = vset.pattern.permute.xlu1 %v1608_v27 }
  0xe2   :  { %529 = vperm.xlu1 %1364, %v1697_v11  }
  0xe6   :  { %1373 = vset.pattern.permute.xlu0 %v1585_v6 }
  0xe7   :  { %210 = vperm.xlu0 %1373, %v1730_v21  }
  0xe8   :  { %1363 = vset.pattern.permute.xlu2 %v1609_v28 }
  0xe9   :  { %730 = vperm.xlu2 %1363, %v1697_v11  }
  0xea   :  { %1366 = vset.pattern.permute.xlu1 %v1610_v29 }
  0xeb   :  { %541 = vperm.xlu1 %1366, %v1697_v11  }
  0xef   :  { %1378 = vset.pattern.permute.xlu0 %v1599_v16 }
  0xf0   :  { %270 = vperm.xlu0 %1378, %v1730_v21  }
  0xf1   :  { %1365 = vset.pattern.permute.xlu2 %v1611_v30 }
  0xf2   :  { %742 = vperm.xlu2 %1365, %v1697_v11  }
  0xf3   :  { %1371 = vset.pattern.permute.xlu1 %v1612_v31 }
  0xf4   :  { %991 = vperm.xlu1 %1371, %v1697_v11  }
  0xf5   :  { %v415_v32 = vpop.permute.xlu2 %414 }
  0xf8   :  { %1380 = vset.pattern.permute.xlu0 %v1603_v22 }
  0xf9   :  { %407 = vperm.xlu0 %1380, %v1730_v21  }
  0xfa   :  { %1367 = vset.pattern.permute.xlu2 %v1613_v33 }
  0xfb   :  { %754 = vperm.xlu2 %1367, %v1697_v11  }
  0xfc   :  { %442 = vrot.lane.b32.xlu1 %v1730_v21, %s1589_s18 }
  0xfd   :  { %1376 = vset.pattern.permute.xlu1 %v1600_v17  ;;  %v1763_v34 = vpop.permute.xlu2 %675 }
 0x101   :  { %1388 = vset.pattern.permute.xlu0 %v1614_v35 }
 0x102   :  { %1015 = vperm.xlu0 %1388, %v1697_v11  }
 0x103   :  { %1368 = vset.pattern.permute.xlu2 %v1615_v36 }
 0x104   :  { %440 = vrot.lane.b32.xlu1 %v1730_v21, %s1592_s2  ;;  %766 = vperm.xlu2 %1368, %v1697_v11  }
 0x105   :  { %v1770_v37 = vpop.permute.xlu2 %936 }
 0x10a   :  { %1393 = vset.pattern.permute.xlu0 %v1611_v30 }
 0x10b   :  { %746 = vperm.xlu0 %1393, %v1730_v21  }
 0x10c   :  { %703 = vrot.lane.b32.xlu1 %v1730_v21, %s1591_s20  ;;  %1370 = vset.pattern.permute.xlu2 %v1616_v38 }
 0x10d   :  { %v1776_v39 = vpop.permute.xlu1 %673  ;;  %778 = vperm.xlu2 %1370, %v1697_v11   ;;  %v1781_v41 = vpop.permute.xlu2 %142 }
 0x10e   :  { %v153_v40 = vpop.permute.xlu0 %152 }
 0x10f   :  { %1270 = vmatpush.xpose.msk.msra.mxu1 %vm154_vm1, %v153_v40 }
 0x112   :  { %1271 = vmatmul.msk.f32.vlgmr.msra.gmra.mxu1 %vm154_vm1, %v1697_v11 }
 0x113   :  { %1276 = vmatpush.xpose.msk.msrb.mxu1 %vm154_vm1, %v415_v32  ;;  %1398 = vset.pattern.permute.xlu0 %v1615_v36  ;;  %v1929_v32 = vld [vmem:[#allocation7 + $0x40] sm:$0xff]  ;;  %v1936_v36 = vld [vmem:[#allocation7 + $0x28] sm:$0xff] }
 0x114   :  { %770 = vperm.xlu0 %1398, %v1730_v21   ;;  %962 = vrot.lane.b32.xlu1 %v1730_v21, %s1595_s22 }
 0x115   :  { %v1788_v42 = vpop.permute.xlu1 %206  ;;  %701 = vrot.lane.b32.xlu2 %v1730_v21, %s1588_s17 }
 0x116   :  { %v413_v43 = vpop.permute.xlu0 %412  ;;  %1374 = vset.pattern.permute.xlu2 %v1597_v14  ;;  %v1794_v44 = vpop.permute.xlu2 %218 }
 0x11a   :  { %1277 = vmatmul.msk.f32.vlgmr.msrb.gmra.mxu1 %vm154_vm1, %v413_v43 }
 0x11c   :  { %1399 = vset.pattern.permute.xlu0 %v1617_v45  ;;  %246 = vperm.xlu1 %1376, %v1730_v21  }
 0x11d   :  { %790 = vperm.xlu0 %1399, %v1697_v11   ;;  %222 = vperm.xlu2 %1374, %v1730_v21  }
 0x11e   :  { %v1799_v46 = vpop.permute.xlu0 %934  ;;  %v1801_v47 = vpop.permute.xlu1 %230 }
 0x11f   :  { %v1806_v48 = vpop.permute.xlu2 %242 }
 0x124   :  { %1377 = vset.pattern.permute.xlu1 %v1596_v13 }
 0x125   :  { %794 = vperm.xlu0 %1399, %v1730_v21   ;;  %258 = vperm.xlu1 %1377, %v1730_v21  }
 0x126   :  { %1375 = vset.pattern.permute.xlu2 %v1593_v12  ;;  %v1809_v49 = vpop.permute.xlu0 %278 }
 0x127   :  { %234 = vperm.xlu2 %1375, %v1730_v21   ;;  %v1812_v50 = vpop.permute.xlu1 %254 }
 0x128   :  { %v1820_v53 = vpop.permute.xlu2 %403 }
 0x12d   :  { %1408 = vset.pattern.permute.xlu0 %v1618_v51  ;;  %1381 = vset.pattern.permute.xlu1 %v1605_v24  ;;  %v1917_v24 = vld [vmem:[#allocation7 + $0x10] sm:$0xff] }
 0x12e   :  { %1043 = vperm.xlu0 %1408, %v1730_v21   ;;  %473 = vperm.xlu1 %1381, %v1730_v21  }
 0x12f   :  { %1379 = vset.pattern.permute.xlu2 %v1586_v7  ;;  %v1818_v52 = vpop.permute.xlu0 %664 }
 0x130   :  { %282 = vperm.xlu2 %1379, %v1730_v21   ;;  %v1823_v54 = vpop.permute.xlu1 %266 }
 0x131   :  { %v1833_v57 = vpop.permute.xlu2 %469 }
 0x136   :  { %1382 = vset.pattern.permute.xlu1 %v1602_v19  ;;  %1416 = vset.pattern.permute.xlu0 %v1621_v2  ;;  %v1908_v19 = vld [vmem:[#allocation7] sm:$0xff] }
 0x137   :  { %485 = vperm.xlu1 %1382, %v1730_v21   ;;  %v150_v22 = vmul.f32 %v1781_v41, %v1908_v19  ;;  %v1942_v41 = vld [vmem:[#allocation7 + $0x30] sm:$0xff] }
 0x138   :  { %1384 = vset.pattern.permute.xlu2 %v1604_v23  ;;  %v1828_v55 = vpop.permute.xlu0 %925 }
 0x139   :  { %497 = vperm.xlu2 %1384, %v1730_v21   ;;  %v1831_v56 = vpop.permute.xlu1 %481 }
 0x13a   :  { %v1842_v61 = vpop.permute.xlu2 %505 }
 0x13f   :  { %1383 = vset.pattern.permute.xlu1 %v1619_v58 }
 0x140   :  { %v180_v59 = vpop.permute.xlu0 %179  ;;  %1003 = vperm.xlu1 %1383, %v1697_v11  }
 0x141   :  { %1385 = vset.pattern.permute.xlu2 %v1607_v26  ;;  %1272 = vmatpush.xpose.msk.msrb.mxu0 %vm154_vm1, %v180_v59  ;;  %v213_v26 = vmul.f32 %v1788_v42, %v1911_v20  ;;  %v396_v42 = vld [vmem:[#allocation7 + $0x50] sm:$0xff]  ;;  %v1949_v59 = vld [vmem:[#allocation7 + $0x58] sm:$0xff] }
 0x142   :  { %509 = vperm.xlu2 %1385, %v1730_v21   ;;  %v1840_v60 = vpop.permute.xlu1 %493 }
 0x143   :  { %v1851_v0 = vpop.permute.xlu2 %730 }
 0x144   :  { %1273 = vmatmul.msk.f32.vlgmr.msrb.gmra.mxu0 %vm154_vm1, %v1730_v21 }
 0x148   :  { %1386 = vset.pattern.permute.xlu1 %v1598_v15  ;;  %v965_v15 = vpop.permute.xlu0 %964 }
 0x149   :  { %668 = vperm.xlu1 %1386, %v1730_v21  }
 0x14a   :  { %1387 = vset.pattern.permute.xlu2 %v1620_v62 }
 0x14b   :  { %802 = vperm.xlu2 %1387, %v1697_v11   ;;  %v1849_v63 = vpop.permute.xlu1 %517 }
 0x14c   :  { %v1860_v3 = vpop.permute.xlu2 %742 }
 0x151   :  { %1389 = vset.pattern.permute.xlu1 %v1606_v25 }
 0x152   :  { %521 = vperm.xlu1 %1389, %v1730_v21  }
 0x153   :  { %1390 = vset.pattern.permute.xlu2 %v1609_v28  ;;  %v1922_v28 = vld [vmem:[#allocation7 + $0x18] sm:$0xff] }
 0x154   :  { %734 = vperm.xlu2 %1390, %v1730_v21   ;;  %v1857_v1 = vpop.permute.xlu1 %529 }
 0x155   :  { %v1867_v6 = vpop.permute.xlu2 %754 }
 0x15a   :  { %1391 = vset.pattern.permute.xlu1 %v1622_v4 }
 0x15b   :  { %1027 = vperm.xlu1 %1391, %v1697_v11  }
 0x15c   :  { %1392 = vset.pattern.permute.xlu2 %v1608_v27 }
 0x15d   :  { %533 = vperm.xlu2 %1392, %v1730_v21   ;;  %v1865_v5 = vpop.permute.xlu1 %541 }
 0x15e   :  { %v1874_v8 = vpop.permute.xlu2 %766 }
 0x163   :  { %1394 = vset.pattern.permute.xlu1 %v1618_v51 }
 0x164   :  { %1039 = vperm.xlu1 %1394, %v1697_v11  }
 0x165   :  { %1395 = vset.pattern.permute.xlu2 %v1610_v29  ;;  %v225_v29 = vmul.f32 %v1794_v44, %v1917_v24  ;;  %v261_v44 = vmul.f32 %v1812_v50, %v1936_v36 }
 0x166   :  { %545 = vperm.xlu2 %1395, %v1730_v21   ;;  %v1872_v7 = vpop.permute.xlu1 %991 }
 0x167   :  { %v1884_v12 = vpop.permute.xlu2 %778 }
 0x16c   :  { %1396 = vset.pattern.permute.xlu1 %v1613_v33  ;;  %v237_v33 = vmul.f32 %v1801_v47, %v1922_v28 }
 0x16d   :  { %758 = vperm.xlu1 %1396, %v1730_v21  }
 0x16e   :  { %1397 = vset.pattern.permute.xlu2 %v1623_v9  ;;  %v443_v10 = vpop.permute.xlu1 %442 }
 0x16f   :  { %1051 = vperm.xlu2 %1397, %v1697_v11   ;;  %1278 = vmatpush.xpose.msk.msra.mxu2 %vm154_vm1, %v443_v10  ;;  %v702_v16 = vpop.permute.xlu2 %701  ;;  %v500_v10 = vmul.f32 %v1840_v60, %v1949_v59 }
 0x173   :  { %1282 = vmatpush.xpose.msk.msrb.mxu2 %vm154_vm1, %v1763_v34 }
 0x175   :  { %1400 = vset.pattern.permute.xlu1 %v1601_v18 }
 0x176   :  { %929 = vperm.xlu1 %1400, %v1730_v21   ;;  %v441_v13 = vpop.permute.xlu1 %440 }
 0x177   :  { %1401 = vset.pattern.permute.xlu2 %v1621_v2  ;;  %1279 = vmatmul.msk.f32.vlgmr.msra.gmra.mxu2 %vm154_vm1, %v441_v13  ;;  %v1905_v18 = vpop.permute.xlu2 %222 }
 0x178   :  { %1063 = vperm.xlu2 %1401, %v1697_v11   ;;  %1288 = vmatpush.xpose.msk.msra.mxu2 %vm154_vm1, %v1770_v37  ;;  %v395_v37 = vld [vmem:[#allocation7 + $0x48] sm:$0xff] }
 0x179   :  { %v476_v45 = vmul.f32 %v1833_v57, %v395_v37 }
 0x17e   :  { %1402 = vset.pattern.permute.xlu1 %v1616_v38  ;;  %v704_v14 = vpop.permute.xlu1 %703 }
 0x17f   :  { %782 = vperm.xlu1 %1402, %v1730_v21   ;;  %1283 = vmatmul.msk.f32.vlgmr.msrb.gmra.mxu2 %vm154_vm1, %v1776_v39  ;;  %v410_v39 = vmul.f32 %v1820_v53, %v1929_v32  ;;  %v488_v53 = vmul.f32 %v1831_v56, %v396_v42 }
 0x180   :  { %1403 = vset.pattern.permute.xlu2 %v1612_v31  ;;  %1284 = vmatpush.xpose.msk.msra.mxu0 %vm154_vm1, %v704_v14  ;;  %v1927_v31 = vld [vmem:[#allocation7 + $0x20] sm:$0xff] }
 0x181   :  { %995 = vperm.xlu2 %1403, %v1730_v21   ;;  %v1934_v34 = vpop.permute.xlu2 %234  ;;  %v249_v38 = vmul.f32 %v1806_v48, %v1927_v31  ;;  %v273_v48 = vmul.f32 %v1823_v54, %v1942_v41 }
 0x183   :  { %1285 = vmatmul.msk.f32.vlgmr.msra.gmra.mxu0 %vm154_vm1, %v702_v16 }
 0x184   :  { %1290 = vmatpush.xpose.msk.msrb.mxu0 %vm154_vm1, %v965_v15 }
 0x186   :  { %v963_v17 = vpop.permute.xlu1 %962 }
 0x187   :  { %1404 = vset.pattern.permute.xlu1 %v1619_v58  ;;  %1289 = vmatmul.msk.f32.vlgmr.msra.gmra.mxu2 %vm154_vm1, %v1799_v46  ;;  %v1947_v58 = vld [vmem:[#allocation7 + $0x38] sm:$0xff] }
 0x188   :  { %1007 = vperm.xlu1 %1404, %v1730_v21   ;;  %v285_v57 = vmul.f32 %v1809_v49, %v1947_v58 }
 0x189   :  { %1405 = vset.pattern.permute.xlu2 %v1620_v62 }
 0x18a   :  { %806 = vperm.xlu2 %1405, %v1730_v21   ;;  %v283_v56 = vpop.permute.xlu2 %282 }
 0x18b   :  { %1291 = vmatmul.msk.f32.vlgmr.msrb.gmra.mxu0 %vm154_vm1, %v963_v17  ;;  %v1966_v17 = vld [vmem:[#allocation7 + $0x70] sm:$0xff] }
 0x18e   :  { %v1915_v23 = vpop.permute.xlu1 %246 }
 0x18f   :  { %v176_v25 = vpop.f32.mrf.mxu1 }
 0x190   :  { %v177_v27 = vadd.f32 %v176_v25, %v150_v22  ;;  %1406 = vset.pattern.permute.xlu1 %v1614_v35 }
 0x191   :  { %1019 = vperm.xlu1 %1406, %v1730_v21  }
 0x192   :  { %v215_v30 = vadd.f32 %v213_v26, %v177_v27  ;;  %1407 = vset.pattern.permute.xlu2 %v1622_v4  ;;  %v1956_v4 = vld [vmem:[#allocation7 + $0x60] sm:$0xff]  ;;  %v1970_v26 = vld [vmem:[#allocation7 + $0x78] sm:$0xff]  ;;  %v536_v27 = vmul.f32 %v1857_v1, %v1966_v17 }
 0x193   :  { %1031 = vperm.xlu2 %1407, %v1730_v21   ;;  %v512_v54 = vmul.f32 %v1842_v61, %v1956_v4 }
 0x194   :  { %v227_v35 = vadd.f32 %v225_v29, %v215_v30  ;;  %v548_v29 = vmul.f32 %v1865_v5, %v1970_v26 }
 0x196   :  { %v239_v40 = vadd.f32 %v237_v33, %v227_v35 }
 0x197   :  { %v437_v43 = vpop.f32.mrf.mxu1  ;;  %v259_v51 = vpop.permute.xlu1 %258 }
 0x198   :  { %v251_v46 = vadd.f32 %v249_v38, %v239_v40  ;;  %v438_v47 = vadd.f32 %v437_v43, %v410_v39 }
 0x199   :  { %1409 = vset.pattern.permute.xlu1 %v1623_v9  ;;  %v1962_v9 = vld [vmem:[#allocation7 + $0x68] sm:$0xff] }
 0x19a   :  { %v478_v62 = vadd.f32 %v476_v45, %v438_v47  ;;  %1055 = vperm.xlu1 %1409, %v1730_v21   ;;  %v263_v50 = vadd.f32 %v261_v44, %v251_v46  ;;  %v524_v22 = vmul.f32 %v1849_v63, %v1962_v9  ;;  %v1980_v63 = vpop.permute.xlu2 %497 }
 0x19c   :  { %v490_v13 = vadd.f32 %v488_v53, %v478_v62  ;;  %v275_v14 = vadd.f32 %v273_v48, %v263_v50 }
 0x19e   :  { %v502_v15 = vadd.f32 %v500_v10, %v490_v13  ;;  %v287_v16 = vadd.f32 %v285_v57, %v275_v14  ;;  %v226_v57 = vmul.f32 %v1905_v18, %v1917_v24  ;;  %v238_v14 = vmul.f32 %v1934_v34, %v1922_v28 }
 0x1a0   :  { %v514_v25 = vadd.f32 %v512_v54, %v502_v15  ;;  %v474_v49 = vpop.permute.xlu1 %473 }
 0x1a1   :  { %v1972_v60 = vmul.f32 %v474_v49, %v395_v37  ;;  %v127_v37 = vlaneseq }
 0x1a2   :  { %1410 = vset.pattern.permute.xlu1 %v1621_v2  ;;  %v526_v61 = vadd.f32 %v524_v22, %v514_v25  ;;  %v1984_v43 = vpop.permute.xlu2 %509  ;;  %v148_v2 = vpop.permute.xlu0 %147  ;;  %v250_v22 = vmul.f32 %v1915_v23, %v1927_v31 }
 0x1a3   :  { %1067 = vperm.xlu1 %1410, %v1730_v21   ;;  %v128_v39 = vshrl.u32 %v127_v37, 7  ;;  %v130_v40 = vand.u32 127, %v127_v37  ;;  %v151_v48 = vmul.f32 %v148_v2, %v1908_v19 }
 0x1a4   :  { %v538_v30 = vadd.f32 %v536_v27, %v526_v61  ;;  %v286_v27 = vmul.f32 %v283_v56, %v1947_v58 }
 0x1a5   :  { %vm1988_vm2 = vcmp.le.s32.totalorder %v130_v40, %v128_v39 }
 0x1a6   :  { %v550_v33 = vadd.f32 %v548_v29, %v538_v30  ;;  %v1994_v5 = vsel %vm1988_vm2, %v287_v16, -inf }
 0x1a8   :  { %v2010_v19 = vsel %vm1988_vm2, %v550_v33, -inf }
 0x1a9   :  { %v486_v35 = vpop.permute.xlu1 %485  ;;  %v554_v24 = vsel %vm154_vm1, %v2010_v19, -inf }
 0x1aa   :  { %v1982_v38 = vmul.f32 %v486_v35, %v396_v42  ;;  %v293_v42 = vsel %vm154_vm1, %v1994_v5, -inf  ;;  %v1998_v46 = vpop.permute.xlu2 %802  ;;  %v211_v47 = vpop.permute.xlu0 %210 }
 0x1ab   :  { %v214_v62 = vmul.f32 %v211_v47, %v1911_v20  ;;  %v262_v20 = vmul.f32 %v259_v51, %v1936_v36 }
 0x1b2   :  { %v1986_v1 = vpop.permute.xlu1 %1003  ;;  %v735_v54 = vpop.permute.xlu2 %734 }
 0x1b3   :  { %v271_v16 = vpop.permute.xlu0 %270 }
 0x1b4   :  { %v274_v18 = vmul.f32 %v271_v16, %v1942_v41 }
 0x1ba   :  { %v534_v31 = vpop.permute.xlu2 %533 }
 0x1bb   :  { %v669_v45 = vpop.permute.xlu1 %668  ;;  %v408_v29 = vpop.permute.xlu0 %407 }
 0x1bc   :  { %294 = vmax.xlane.f32.xlu2 %v293_v42  ;;  %v411_v47 = vmul.f32 %v408_v29, %v1929_v32  ;;  %v513_v32 = vmul.f32 %v1984_v43, %v1956_v4  ;;  %v537_v4 = vmul.f32 %v534_v31, %v1966_v17  ;;  %v916_v43 = vld [vmem:[#allocation7 + $0xc0] sm:$0xff] }
 0x1bd   :  { %v932_v17 = vmul.f32 %v1828_v55, %v916_v43 }
 0x1c1   :  { %v202_v53 = vpop.f32.mrf.mxu0 }
 0x1c2   :  { %v203_v50 = vadd.f32 %v202_v53, %v151_v48  ;;  %v546_v51 = vpop.permute.xlu2 %545 }
 0x1c3   :  { %v2027_v33 = vpop.permute.xlu0 %1015 }
 0x1c4   :  { %v216_v10 = vadd.f32 %v214_v62, %v203_v50  ;;  %v522_v13 = vpop.permute.xlu1 %521 }
 0x1c6   :  { %v228_v15 = vadd.f32 %v226_v57, %v216_v10  ;;  %v655_v57 = vld [vmem:[#allocation7 + $0x80] sm:$0xff] }
 0x1c7   :  { %v672_v16 = vmul.f32 %v669_v45, %v655_v57 }
 0x1c8   :  { %v240_v25 = vadd.f32 %v238_v14, %v228_v15  ;;  %v656_v14 = vld [vmem:[#allocation7 + $0x88] sm:$0xff]  ;;  %v501_v15 = vmul.f32 %v1980_v63, %v1949_v59  ;;  %v658_v59 = vld [vmem:[#allocation7 + $0x98] sm:$0xff] }
 0x1ca   :  { %v252_v49 = vadd.f32 %v250_v22, %v240_v25  ;;  %v2029_v37 = vpop.permute.xlu2 %1051  ;;  %v671_v25 = vmul.f32 %v1818_v52, %v655_v57 }
 0x1cb   :  { %v747_v58 = vpop.permute.xlu0 %746 }
 0x1cc   :  { %v264_v28 = vadd.f32 %v262_v20, %v252_v49  ;;  %v657_v49 = vld [vmem:[#allocation7 + $0x90] sm:$0xff] }
 0x1cd   :  { %v2016_v34 = vpop.permute.xlu1 %1027  ;;  %555 = vmax.xlane.f32.xlu1 %v554_v24 }
 0x1ce   :  { %v276_v23 = vadd.f32 %v274_v18, %v264_v28  ;;  %v738_v18 = vmul.f32 %v735_v54, %v656_v14  ;;  %v659_v54 = vld [vmem:[#allocation7 + $0xa0] sm:$0xff] }
 0x1cf   :  { %v773_v31 = vmul.f32 %v1874_v8, %v659_v54 }
 0x1d0   :  { %v288_v61 = vadd.f32 %v286_v27, %v276_v23  ;;  %v737_v27 = vmul.f32 %v1851_v0, %v656_v14 }
 0x1d2   :  { %v2021_v30 = vsel %vm1988_vm2, %v288_v61, -inf  ;;  %v2031_v39 = vpop.permute.xlu2 %1063 }
 0x1d3   :  { %v296_v36 = vsel %vm154_vm1, %v2021_v30, -inf  ;;  %v771_v40 = vpop.permute.xlu0 %770 }
 0x1d4   :  { %297 = vmax.xlane.f32.xlu0 %v296_v36  ;;  %v774_v14 = vmul.f32 %v771_v40, %v659_v54 }
 0x1d6   :  { %v2025_v41 = vpop.permute.xlu1 %1039 }
 0x1db   :  { %v996_v42 = vpop.permute.xlu2 %995  ;;  %v791_v48 = vpop.permute.xlu0 %790 }
 0x1df   :  { %v759_v35 = vpop.permute.xlu1 %758 }
 0x1e0   :  { %v762_v0 = vmul.f32 %v759_v35, %v658_v59 }
 0x1e3   :  { %v795_v63 = vpop.permute.xlu0 %794 }
 0x1e4   :  { %v2042_v23 = vpop.permute.xlu2 %806 }
 0x1e8   :  { %v930_v56 = vpop.permute.xlu1 %929 }
 0x1f1   :  { %v783_v2 = vpop.permute.xlu1 %782 }
 0x1fa   :  { %v465_v53 = vpop.f32.mrf.mxu2  ;;  %v1008_v62 = vpop.permute.xlu1 %1007 }
 0x1fb   :  { %v466_v50 = vadd.f32 %v465_v53, %v411_v47  ;;  %v749_v47 = vmul.f32 %v1860_v3, %v657_v49  ;;  %v917_v53 = vld [vmem:[#allocation7 + $0xc8] sm:$0xff] }
 0x1fc   :  { %v998_v35 = vmul.f32 %v1872_v7, %v917_v53 }
 0x1fd   :  { %v479_v10 = vadd.f32 %v1972_v60, %v466_v50  ;;  %v750_v60 = vmul.f32 %v747_v58, %v657_v49 }
 0x1ff   :  { %v491_v22 = vadd.f32 %v1982_v38, %v479_v10  ;;  %v525_v38 = vmul.f32 %v522_v13, %v1962_v9  ;;  %v761_v10 = vmul.f32 %v1867_v6, %v658_v59  ;;  %v549_v9 = vmul.f32 %v546_v51, %v1970_v26  ;;  %v660_v13 = vld [vmem:[#allocation7 + $0xa8] sm:$0xff] }
 0x200   :  { %v726_v20 = vpop.f32.mrf.mxu0  ;;  %v785_v26 = vmul.f32 %v1884_v12, %v660_v13 }
 0x201   :  { %v503_v24 = vadd.f32 %v501_v15, %v491_v22  ;;  %v727_v28 = vadd.f32 %v726_v20, %v672_v16  ;;  %v661_v15 = vld [vmem:[#allocation7 + $0xb0] sm:$0xff]  ;;  %v933_v16 = vmul.f32 %v930_v56, %v916_v43  ;;  %v999_v20 = vmul.f32 %v996_v42, %v917_v53 }
 0x202   :  { %v698_v61 = vpop.f32.mrf.mxu2  ;;  %v797_v51 = vmul.f32 %v791_v48, %v661_v15  ;;  %v786_v56 = vmul.f32 %v783_v2, %v660_v13  ;;  %v798_v42 = vmul.f32 %v795_v63, %v661_v15  ;;  %v921_v48 = vld [vmem:[#allocation7 + $0xe8] sm:$0xff]  ;;  %v920_v63 = vld [vmem:[#allocation7 + $0xe0] sm:$0xff] }
 0x203   :  { %v515_v45 = vadd.f32 %v513_v32, %v503_v24  ;;  %v740_v52 = vadd.f32 %v738_v18, %v727_v28  ;;  %v699_v29 = vadd.f32 %v698_v61, %v671_v25  ;;  %v1020_v36 = vpop.permute.xlu1 %1019  ;;  %v918_v32 = vld [vmem:[#allocation7 + $0xd0] sm:$0xff]  ;;  %v662_v61 = vld [vmem:[#allocation7 + $0xb8] sm:$0xff] }
 0x204   :  { %v1011_v28 = vmul.f32 %v1008_v62, %v918_v32  ;;  %v1044_v62 = vpop.permute.xlu0 %1043  ;;  %v809_v53 = vmul.f32 %v1998_v46, %v662_v61 }
 0x205   :  { %v752_v58 = vadd.f32 %v750_v60, %v740_v52  ;;  %v739_v50 = vadd.f32 %v737_v27, %v699_v29  ;;  %v527_v57 = vadd.f32 %v525_v38, %v515_v45  ;;  %v919_v60 = vld [vmem:[#allocation7 + $0xd8] sm:$0xff]  ;;  %v1010_v38 = vmul.f32 %v1986_v1, %v918_v32  ;;  %v1032_v45 = vpop.permute.xlu2 %1031 }
 0x206   :  { %v1023_v29 = vmul.f32 %v1020_v36, %v919_v60  ;;  %v1022_v54 = vmul.f32 %v2027_v33, %v919_v60  ;;  %v810_v1 = vmul.f32 %v2042_v23, %v662_v61  ;;  %v1034_v36 = vmul.f32 %v2016_v34, %v920_v63  ;;  %v923_v34 = vld [vmem:[#allocation7 + $0xf8] sm:$0xff] }
 0x207   :  { %v764_v22 = vadd.f32 %v762_v0, %v752_v58  ;;  %v751_v25 = vadd.f32 %v749_v47, %v739_v50  ;;  %v539_v3 = vadd.f32 %v537_v4, %v527_v57  ;;  %v1035_v58 = vmul.f32 %v1032_v45, %v920_v63 }
 0x208   :  { %v987_v49 = vpop.f32.mrf.mxu0  ;;  %v1046_v33 = vmul.f32 %v2025_v41, %v921_v48 }
 0x209   :  { %v776_v18 = vadd.f32 %v774_v14, %v764_v22  ;;  %v763_v6 = vadd.f32 %v761_v10, %v751_v25  ;;  %v988_v40 = vadd.f32 %v987_v49, %v933_v16  ;;  %v551_v24 = vadd.f32 %v549_v9, %v539_v3  ;;  %v922_v22 = vld [vmem:[#allocation7 + $0xf0] sm:$0xff] }
 0x20a   :  { %v959_v27 = vpop.f32.mrf.mxu2  ;;  %v1047_v14 = vmul.f32 %v1044_v62, %v921_v48  ;;  %v1058_v41 = vmul.f32 %v2029_v37, %v922_v22 }
 0x20b   :  { %v775_v55 = vadd.f32 %v773_v31, %v763_v6  ;;  %v1001_v59 = vadd.f32 %v999_v20, %v988_v40  ;;  %v960_v8 = vadd.f32 %v959_v27, %v932_v17  ;;  %v2055_v7 = vsel %vm1988_vm2, %v551_v24, -inf }
 0x20c   :  { %v1056_v52 = vpop.permute.xlu1 %1055  ;;  %v557_v12 = vsel %vm154_vm1, %v2055_v7, -inf  ;;  %v788_v2 = vadd.f32 %v786_v56, %v776_v18  ;;  %v1070_v6 = vmul.f32 %v2031_v39, %v923_v34  ;;  %v1411_v39 = vpack.i.bf16 %v1730_v21, %v1697_v11 }
 0x20d   :  { %v1013_v47 = vadd.f32 %v1011_v28, %v1001_v59  ;;  %v1000_v4 = vadd.f32 %v998_v35, %v960_v8  ;;  %558 = vmax.xlane.f32.xlu2 %v557_v12  ;;  %v787_v43 = vadd.f32 %v785_v26, %v775_v55  ;;  %v1059_v31 = vmul.f32 %v1056_v52, %v922_v22 }
 0x20e   :  { %v800_v0 = vadd.f32 %v798_v42, %v788_v2 }
 0x20f   :  { %v1025_v50 = vadd.f32 %v1023_v29, %v1013_v47  ;;  %v1012_v57 = vadd.f32 %v1010_v38, %v1000_v4  ;;  %v799_v10 = vadd.f32 %v797_v51, %v787_v43 }
 0x210   :  { %v812_v9 = vadd.f32 %v810_v1, %v800_v0 }
 0x211   :  { %v1024_v13 = vadd.f32 %v1022_v54, %v1012_v57  ;;  %v1037_v15 = vadd.f32 %v1035_v58, %v1025_v50  ;;  %v811_v16 = vadd.f32 %v809_v53, %v799_v10 }
 0x212   :  { %v2067_v46 = vsel %vm1988_vm2, %v812_v9, -inf }
 0x213   :  { %v1036_v23 = vadd.f32 %v1034_v36, %v1024_v13  ;;  %v1049_v25 = vadd.f32 %v1047_v14, %v1037_v15  ;;  %v818_v3 = vsel %vm154_vm1, %v2067_v46, -inf  ;;  %v2073_v17 = vsel %vm1988_vm2, %v811_v16, -inf }
 0x214   :  { %819 = vmax.xlane.f32.xlu0 %v818_v3  ;;  %v815_v35 = vsel %vm154_vm1, %v2073_v17, -inf }
 0x215   :  { %v1068_v20 = vpop.permute.xlu1 %1067  ;;  %816 = vmax.xlane.f32.xlu2 %v815_v35  ;;  %v1048_v49 = vadd.f32 %v1046_v33, %v1036_v23  ;;  %v1061_v32 = vadd.f32 %v1059_v31, %v1049_v25 }
 0x216   :  { %v1071_v18 = vmul.f32 %v1068_v20, %v923_v34 }
 0x217   :  { %v1060_v40 = vadd.f32 %v1058_v41, %v1048_v49 }
 0x218   :  { %v1073_v24 = vadd.f32 %v1071_v18, %v1061_v32 }
 0x219   :  { %v1072_v26 = vadd.f32 %v1070_v6, %v1060_v40 }
 0x21a   :  { %v1075_v51 = vsel %vm1988_vm2, %v1073_v24, -inf }
 0x21b   :  { %v1079_v56 = vsel %vm154_vm1, %v1075_v51, -inf  ;;  %v2084_v28 = vsel %vm1988_vm2, %v1072_v26, -inf }
 0x21c   :  { %1080 = vmax.xlane.f32.xlu1 %v1079_v56  ;;  %v1076_v37 = vsel %vm154_vm1, %v2084_v28, -inf }
 0x21d   :  { %1077 = vmax.xlane.f32.xlu2 %v1076_v37 }
 0x22f   :  { %v295_v61 = vpop.xlane.xlu2 %294 }
 0x230   :  { %v299_v59 = vsub.f32 %v1994_v5, %v295_v61 }
 0x232   :  { %v301_v42 = vmul.f32 1.442695, %v299_v59 }
 0x235   :  { %1412 = vrot.lane.b32.xlu2 %v1411_v39, %s1624_s23  ;;  %602 = vrot.lane.b32.xlu1 %v1697_v11, %s1625_s24 }
 0x240   :  { %v556_v44 = vpop.xlane.xlu1 %555 }
 0x241   :  { %v560_v8 = vsub.f32 %v2010_v19, %v556_v44 }
 0x243   :  { %v562_v38 = vmul.f32 1.442695, %v560_v8 }
 0x247   :  { %v298_v27 = vpop.xlane.xlu0 %297 }
 0x248   :  { %v300_v60 = vsub.f32 %v2021_v30, %v298_v27 }
 0x24a   :  { %v303_v55 = vmul.f32 1.442695, %v300_v60 }
 0x24c   :  { %1419 = vpow2.f32 %v303_v55 }
 0x24d   :  { %1421 = vpow2.f32 %v301_v42 }
 0x24e   :  { %1423 = vpow2.f32 %v562_v38 }
 0x252   :  { %v2094_v45 = vpop.eup %1419 }
 0x253   :  { %v308_v52 = vsel %vm154_vm1, %v2094_v45, 0.0  ;;  %v2098_v12 = vpop.eup %1421 }
 0x254   :  { %309 = vadd.xlane.f32.xlu0 %v308_v52  ;;  %v2100_v30 = vpop.eup %1423  ;;  %v305_v5 = vsel %vm154_vm1, %v2098_v12, 0.0 }
 0x255   :  { %v566_v19 = vsel %vm154_vm1, %v2100_v30, 0.0 }
 0x25e   :  { %306 = vadd.xlane.f32.xlu2 %v305_v5 }
 0x25f   :  { %567 = vadd.xlane.f32.xlu1 %v566_v19 }
 0x276   :  { %863 = vrot.lane.b32.xlu2 %v1697_v11, %s1626_s25 }
 0x27e   :  { %628 = vrot.lane.b32.xlu2 %v1730_v21, %s1625_s24 }
 0x280   :  { %v559_v2 = vpop.xlane.xlu2 %558 }
 0x281   :  { %v561_v48 = vsub.f32 %v2055_v7, %v559_v2 }
 0x283   :  { %v564_v62 = vmul.f32 1.442695, %v561_v48 }
 0x285   :  { %1425 = vpow2.f32 %v564_v62 }
 0x286   :  { %1150 = vrot.lane.b32.xlu2 %v1730_v21, %s1627_s26 }
 0x287   :  { %v820_v29 = vpop.xlane.xlu0 %819 }
 0x288   :  { %v822_v47 = vsub.f32 %v2067_v46, %v820_v29  ;;  %v817_v4 = vpop.xlane.xlu2 %816 }
 0x289   :  { %v821_v54 = vsub.f32 %v2073_v17, %v817_v4 }
 0x28a   :  { %v825_v43 = vmul.f32 1.442695, %v822_v47 }
 0x28b   :  { %v2114_v53 = vpop.eup %1425  ;;  %v823_v7 = vmul.f32 1.442695, %v821_v54 }
 0x28c   :  { %1427 = vpow2.f32 %v825_v43  ;;  %v569_v63 = vsel %vm154_vm1, %v2114_v53, 0.0 }
 0x28d   :  { %570 = vadd.xlane.f32.xlu1 %v569_v63  ;;  %1429 = vpow2.f32 %v823_v7 }
 0x28f   :  { %v1081_v1 = vpop.xlane.xlu1 %1080 }
 0x290   :  { %v1078_v0 = vpop.xlane.xlu2 %1077  ;;  %v1083_v50 = vsub.f32 %v1075_v51, %v1081_v1 }
 0x291   :  { %v1082_v15 = vsub.f32 %v2084_v28, %v1078_v0 }
 0x292   :  { %v2118_v58 = vpop.eup %1427  ;;  %v1086_v10 = vmul.f32 1.442695, %v1083_v50 }
 0x293   :  { %v830_v57 = vsel %vm154_vm1, %v2118_v58, 0.0  ;;  %v2122_v14 = vpop.eup %1429  ;;  %v1084_v22 = vmul.f32 1.442695, %v1082_v15 }
 0x294   :  { %831 = vadd.xlane.f32.xlu0 %v830_v57  ;;  %1431 = vpow2.f32 %v1086_v10  ;;  %v827_v16 = vsel %vm154_vm1, %v2122_v14, 0.0 }
 0x295   :  { %1433 = vpow2.f32 %v1084_v22 }
 0x298   :  { %v1413_v9 = vpop.permute.xlu2 %1412 }
 0x299   :  { %v1414_v36 = vunpack.i.l.bf16 %v1413_v9  ;;  %v1415_v13 = vunpack.i.h.bf16 %v1413_v9 }
 0x29a   :  { %v2127_v33 = vpop.eup %1431 }
 0x29b   :  { %362 = vmatpush.msra.mxu3 %v1414_v36  ;;  %v1091_v46 = vsel %vm154_vm1, %v2127_v33, 0.0  ;;  %v2133_v23 = vpop.eup %1433 }
 0x29c   :  { %828 = vadd.xlane.f32.xlu0 %v827_v16  ;;  %v1088_v25 = vsel %vm154_vm1, %v2133_v23, 0.0 }
 0x29d   :  { %388 = vmatpush.msrb.mxu3 %v1415_v13 }
 0x2a4   :  { %1092 = vadd.xlane.f32.xlu0 %v1091_v46 }
 0x2a6   :  { %889 = vrot.lane.b32.xlu1 %v1730_v21, %s1626_s25 }
 0x2a7   :  { %v603_v17 = vpop.permute.xlu1 %602 }
 0x2ac   :  { %1089 = vadd.xlane.f32.xlu0 %v1088_v25 }
 0x2c0   :  { %1124 = vrot.lane.b32.xlu0 %v1697_v11, %s1627_s26 }
 0x2c7   :  { %v310_v3 = vpop.xlane.xlu0 %309 }
 0x2c8   :  { %1435 = vrcp.f32 %v310_v3  ;;  %v337_v61 = vand.u32 2147483648, %v310_v3  ;;  %vm331_vm8 = vweird.f32 %v310_v3  ;;  %v335_v55 = vand.u32 2147483647, %v310_v3 }
 0x2ca   :  { %v338_v38 = vor.u32 1.1754944e-38, %v337_v61  ;;  %vm336_vm10 = vcmp.eq.f32.partialorder %v335_v55, 8.507059e+37 }
 0x2ce   :  { %v1436_v31 = vpop.eup %1435 }
 0x2cf   :  { %v327_v41 = vmul.f32 %v1436_v31, %v310_v3  ;;  %vm332_vm5 = vweird.f32 %v1436_v31 }
 0x2d0   :  { %vm333_vm9 = vmor %vm331_vm8, %vm332_vm5 }
 0x2d1   :  { %v307_v34 = vpop.xlane.xlu2 %306  ;;  %v328_v21 = vsub.f32 1.0, %v327_v41 }
 0x2d2   :  { %1437 = vrcp.f32 %v307_v34  ;;  %v568_v35 = vpop.xlane.xlu1 %567  ;;  %v322_v40 = vand.u32 2147483648, %v307_v34  ;;  %v320_v24 = vand.u32 2147483647, %v307_v34  ;;  %vm316_vm4 = vweird.f32 %v307_v34 }
 0x2d3   :  { %1439 = vrcp.f32 %v568_v35  ;;  %v329_v26 = vmul.f32 %v1436_v31, %v328_v21  ;;  %v583_v19 = vand.u32 2147483648, %v568_v35  ;;  %vm577_vm12 = vweird.f32 %v568_v35 }
 0x2d4   :  { %v323_v28 = vor.u32 1.1754944e-38, %v322_v40  ;;  %vm321_vm7 = vcmp.eq.f32.partialorder %v320_v24, 8.507059e+37  ;;  %v581_v2 = vand.u32 2147483647, %v568_v35 }
 0x2d5   :  { %v330_v37 = vadd.f32 %v1436_v31, %v329_v26 }
 0x2d6   :  { %vm582_vm14 = vcmp.eq.f32.partialorder %v581_v2, 8.507059e+37 }
 0x2d7   :  { %v334_v42 = vsel %vm333_vm9, %v1436_v31, %v330_v37 }
 0x2d8   :  { %v1438_v20 = vpop.eup %1437  ;;  %v339_v52 = vsel %vm336_vm10, %v338_v38, %v334_v42 }
 0x2d9   :  { %v312_v49 = vmul.f32 %v1438_v20, %v307_v34  ;;  %v864_v32 = vpop.permute.xlu2 %863  ;;  %v1440_v18 = vpop.eup %1439  ;;  %vm317_vm3 = vweird.f32 %v1438_v20  ;;  %v340_v48 = vmul.f32 %v2094_v45, %v339_v52 }
 0x2da   :  { %v573_v11 = vmul.f32 %v1440_v18, %v568_v35  ;;  %vm318_vm6 = vmor %vm316_vm4, %vm317_vm3  ;;  %vm578_vm11 = vweird.f32 %v1440_v18 }
 0x2db   :  { %v313_v6 = vsub.f32 1.0, %v312_v49  ;;  %vm579_vm13 = vmor %vm577_vm12, %vm578_vm11 }
 0x2dc   :  { %v574_v39 = vsub.f32 1.0, %v573_v11 }
 0x2dd   :  { %v314_v51 = vmul.f32 %v1438_v20, %v313_v6 }
 0x2de   :  { %v575_v8 = vmul.f32 %v1440_v18, %v574_v39 }
 0x2df   :  { %v315_v56 = vadd.f32 %v1438_v20, %v314_v51 }
 0x2e0   :  { %v576_v5 = vadd.f32 %v1440_v18, %v575_v8 }
 0x2e1   :  { %v629_v27 = vpop.permute.xlu2 %628  ;;  %v319_v60 = vsel %vm318_vm6, %v1438_v20, %v315_v56 }
 0x2e2   :  { %649 = vmatpush.msra.mxu1 %v629_v27  ;;  %v324_v44 = vsel %vm321_vm7, %v323_v28, %v319_v60  ;;  %v580_v62 = vsel %vm579_vm13, %v1440_v18, %v576_v5 }
 0x2e3   :  { %v325_v59 = vmul.f32 %v2098_v12, %v324_v44  ;;  %v584_v12 = vor.u32 1.1754944e-38, %v583_v19 }
 0x2e5   :  { %1274 = vmatmul.msk.f32.vlgmr.msra.gmra.mxu3 %vm154_vm1, %v325_v59  ;;  %v585_v29 = vsel %vm582_vm14, %v584_v12, %v580_v62 }
 0x2e6   :  { %623 = vmatpush.msra.mxu3 %v603_v17  ;;  %v586_v47 = vmul.f32 %v2100_v30, %v585_v29 }
 0x2e9   :  { %v1151_v49 = vpop.permute.xlu2 %1150 }
 0x2ed   :  { %1275 = vmatmul.msk.f32.vlgmr.msrb.gmra.mxu3 %vm154_vm1, %v340_v48 }
 0x2ee   :  { %884 = vmatpush.msrb.mxu3 %v864_v32 }
 0x2f5   :  { %1280 = vmatmul.msk.f32.vlgmr.msra.gmra.mxu3 %vm154_vm1, %v586_v47 }
 0x300   :  { %v571_v4 = vpop.xlane.xlu1 %570 }
 0x301   :  { %1441 = vrcp.f32 %v571_v4  ;;  %v598_v45 = vand.u32 2147483648, %v571_v4  ;;  %v596_v0 = vand.u32 2147483647, %v571_v4  ;;  %vm592_vm2 = vweird.f32 %v571_v4 }
 0x303   :  { %v599_v10 = vor.u32 1.1754944e-38, %v598_v45  ;;  %vm597_vm4 = vcmp.eq.f32.partialorder %v596_v0, 8.507059e+37  ;;  %v1211_v0 = vld [vmem:[#allocation8 + $0x18] sm:$0xff] }
 0x304   :  { %1234 = vmatpush.msrb.mxu2 %v1211_v0 }
 0x307   :  { %v1442_v43 = vpop.eup %1441  ;;  %v832_v54 = vpop.xlane.xlu0 %831 }
 0x308   :  { %v588_v63 = vmul.f32 %v1442_v43, %v571_v4  ;;  %1443 = vrcp.f32 %v832_v54  ;;  %vm593_vm15 = vweird.f32 %v1442_v43  ;;  %v859_v16 = vand.u32 2147483648, %v832_v54 }
 0x309   :  { %vm594_vm3 = vmor %vm592_vm2, %vm593_vm15  ;;  %v857_v25 = vand.u32 2147483647, %v832_v54  ;;  %vm853_vm6 = vweird.f32 %v832_v54 }
 0x30a   :  { %v589_v7 = vsub.f32 1.0, %v588_v63  ;;  %v860_v34 = vor.u32 1.1754944e-38, %v859_v16 }
 0x30b   :  { %vm858_vm8 = vcmp.eq.f32.partialorder %v857_v25, 8.507059e+37 }
 0x30c   :  { %v590_v1 = vmul.f32 %v1442_v43, %v589_v7 }
 0x30e   :  { %v1444_v50 = vpop.eup %1443  ;;  %v591_v57 = vadd.f32 %v1442_v43, %v590_v1 }
 0x30f   :  { %v849_v9 = vmul.f32 %v1444_v50, %v832_v54  ;;  %v829_v30 = vpop.xlane.xlu0 %828  ;;  %vm854_vm5 = vweird.f32 %v1444_v50 }
 0x310   :  { %v595_v36 = vsel %vm594_vm3, %v1442_v43, %v591_v57  ;;  %1445 = vrcp.f32 %v829_v30  ;;  %vm855_vm7 = vmor %vm853_vm6, %vm854_vm5  ;;  %v842_v40 = vand.u32 2147483647, %v829_v30  ;;  %vm838_vm10 = vweird.f32 %v829_v30  ;;  %v1209_v57 = vld [vmem:[#allocation8 + $0x8] sm:$0xff] }
 0x311   :  { %v600_v13 = vsel %vm597_vm4, %v599_v10, %v595_v36  ;;  %v850_v15 = vsub.f32 1.0, %v849_v9  ;;  %v1208_v10 = vld [vmem:[#allocation8] sm:$0xff] }
 0x312   :  { %v601_v22 = vmul.f32 %v2114_v53, %v600_v13  ;;  %v844_v53 = vand.u32 2147483648, %v829_v30  ;;  %vm843_vm12 = vcmp.eq.f32.partialorder %v842_v40, 8.507059e+37 }
 0x313   :  { %v851_v46 = vmul.f32 %v1444_v50, %v850_v15 }
 0x314   :  { %1281 = vmatmul.msk.f32.vlgmr.msra.gmra.mxu1 %vm154_vm1, %v601_v22  ;;  %v845_v51 = vor.u32 1.1754944e-38, %v844_v53 }
 0x315   :  { %v852_v3 = vadd.f32 %v1444_v50, %v851_v46 }
 0x316   :  { %v1446_v17 = vpop.eup %1445 }
 0x317   :  { %v856_v31 = vsel %vm855_vm7, %v1444_v50, %v852_v3  ;;  %v834_v35 = vmul.f32 %v1446_v17, %v829_v30  ;;  %v1093_v41 = vpop.xlane.xlu0 %1092  ;;  %vm839_vm9 = vweird.f32 %v1446_v17  ;;  %v1210_v50 = vld [vmem:[#allocation8 + $0x10] sm:$0xff]  ;;  %vm1202_vm7 = vcmask 130048  }
 0x318   :  { %v861_v20 = vsel %vm858_vm8, %v860_v34, %v856_v31  ;;  %1447 = vrcp.f32 %v1093_v41  ;;  %v890_v21 = vpop.permute.xlu1 %889  ;;  %vm840_vm11 = vmor %vm838_vm10, %vm839_vm9  ;;  %v1118_v61 = vand.u32 2147483647, %v1093_v41  ;;  %vm1114_vm14 = vweird.f32 %v1093_v41  ;;  %1235 = vmatpush.msrb.mxu2 %v1210_v50  ;;  %v1418_v31 = vld [vmem:[%s2175_s5] ss:$0 sm:$0xff] }
 0x319   :  { %v835_v32 = vsub.f32 1.0, %v834_v35  ;;  %910 = vmatpush.msrb.mxu1 %v890_v21  ;;  %v862_v18 = vmul.f32 %v2118_v58, %v861_v20  ;;  %v1120_v58 = vand.u32 2147483648, %v1093_v41  ;;  %vm1205_vm8 = vcmask 195584  }
 0x31a   :  { %vm1119_vm2 = vcmp.eq.f32.partialorder %v1118_v61, 8.507059e+37  ;;  %1236 = vmatpush.msrb.mxu2 %v1209_v57 }
 0x31b   :  { %1171 = vmatpush.msra.mxu1 %v1151_v49  ;;  %v836_v6 = vmul.f32 %v1446_v17, %v835_v32  ;;  %v1121_v59 = vor.u32 1.1754944e-38, %v1120_v58 }
 0x31c   :  { %1287 = vmatmul.msk.f32.vlgmr.msrb.gmra.mxu1 %vm154_vm1, %v862_v18  ;;  %1237 = vmatpush.msrb.mxu2 %v1208_v10 }
 0x31d   :  { %v837_v24 = vadd.f32 %v1446_v17, %v836_v6 }
 0x31e   :  { %v1448_v26 = vpop.eup %1447 }
 0x31f   :  { %v841_v11 = vsel %vm840_vm11, %v1446_v17, %v837_v24  ;;  %v1110_v56 = vmul.f32 %v1448_v26, %v1093_v41  ;;  %v1090_v28 = vpop.xlane.xlu0 %1089  ;;  %vm1115_vm13 = vweird.f32 %v1448_v26 }
 0x320   :  { %v846_v37 = vsel %vm843_vm12, %v845_v51, %v841_v11  ;;  %1449 = vrcp.f32 %v1090_v28  ;;  %vm1116_vm15 = vmor %vm1114_vm14, %vm1115_vm13  ;;  %v1105_v19 = vand.u32 2147483648, %v1090_v28  ;;  %v1103_v2 = vand.u32 2147483647, %v1090_v28 }
 0x321   :  { %v1111_v39 = vsub.f32 1.0, %v1110_v56  ;;  %v847_v27 = vmul.f32 %v2122_v14, %v846_v37  ;;  %vm1099_vm4 = vweird.f32 %v1090_v28 }
 0x322   :  { %v1106_v62 = vor.u32 1.1754944e-38, %v1105_v19  ;;  %vm1104_vm6 = vcmp.eq.f32.partialorder %v1103_v2, 8.507059e+37 }
 0x323   :  { %v1112_v60 = vmul.f32 %v1448_v26, %v1111_v39  ;;  %1286 = vmatmul.msk.f32.vlgmr.msrb.gmra.mxu3 %vm154_vm1, %v847_v27 }
 0x325   :  { %v1113_v44 = vadd.f32 %v1448_v26, %v1112_v60 }
 0x326   :  { %v1450_v55 = vpop.eup %1449 }
 0x327   :  { %v1117_v8 = vsel %vm1116_vm15, %v1448_v26, %v1113_v44  ;;  %v1095_v42 = vmul.f32 %v1450_v55, %v1090_v28  ;;  %vm1100_vm3 = vweird.f32 %v1450_v55 }
 0x328   :  { %v1122_v38 = vsel %vm1119_vm2, %v1121_v59, %v1117_v8  ;;  %vm1101_vm5 = vmor %vm1099_vm4, %vm1100_vm3 }
 0x329   :  { %v1096_v52 = vsub.f32 1.0, %v1095_v42  ;;  %v1123_v5 = vmul.f32 %v2127_v33, %v1122_v38 }
 0x32b   :  { %v1097_v14 = vmul.f32 %v1450_v55, %v1096_v52  ;;  %1293 = vmatmul.msk.f32.vlgmr.msra.gmra.mxu1 %vm154_vm1, %v1123_v5 }
 0x32d   :  { %v1098_v48 = vadd.f32 %v1450_v55, %v1097_v14 }
 0x32f   :  { %v1102_v12 = vsel %vm1101_vm5, %v1450_v55, %v1098_v48 }
 0x330   :  { %v1107_v29 = vsel %vm1104_vm6, %v1106_v62, %v1102_v12 }
 0x331   :  { %v1108_v47 = vmul.f32 %v2133_v23, %v1107_v29 }
 0x332   :  { %v1125_v4 = vpop.permute.xlu0 %1124 }
 0x333   :  { %1145 = vmatpush.msra.mxu3 %v1125_v4 }
 0x334   :  { %1292 = vmatmul.msk.f32.vlgmr.msra.gmra.mxu3 %vm154_vm1, %v1108_v47 }
 0x368   :  { %v364_v33 = vpop.f32.mrf.mxu3 }
 0x370   :  { %v390_v43 = vpop.f32.mrf.mxu3 }
 0x378   :  { %v625_v54 = vpop.f32.mrf.mxu3 }
 0x379   :  { %1178 = vrot.lane.b32.xlu1 %v625_v54, %s1581_s30 }
 0x391   :  { %v651_v63 = vpop.f32.mrf.mxu1 }
 0x392   :  { %1180 = vrot.lane.b32.xlu0 %v651_v63, %s1581_s30 }
 0x399   :  { %v912_v45 = vpop.f32.mrf.mxu1 }
 0x3a6   :  { %v886_v7 = vpop.f32.mrf.mxu3 }
 0x3a7   :  { %1186 = vrot.lane.b32.xlu2 %v886_v7, %s1628_s27 }
 0x3a8   :  { %v1173_v23 = vpop.f32.mrf.mxu1 }
 0x3af   :  { %1188 = vrot.lane.b32.xlu2 %v912_v45, %s1628_s27 }
 0x3b7   :  { %v1147_v1 = vpop.f32.mrf.mxu3 }
 0x3b8   :  { %1194 = vrot.lane.b32.xlu1 %v1147_v1, %s1629_s28 }
 0x3c0   :  { %1196 = vrot.lane.b32.xlu1 %v1173_v23, %s1629_s28 }
 0x3eb   :  { %v1179_v9 = vpop.permute.xlu1 %1178 }
 0x3ec   :  { %v1200_v36 = vsel %vm154_vm1, %v364_v33, %v1179_v9 }
 0x401   :  { %v1187_v30 = vpop.permute.xlu2 %1186 }
 0x402   :  { %v1203_v13 = vsel %vm1202_vm7, %v1200_v36, %v1187_v30 }
 0x404   :  { %v1181_v22 = vpop.permute.xlu0 %1180 }
 0x405   :  { %v1201_v25 = vsel %vm154_vm1, %v390_v43, %v1181_v22 }
 0x409   :  { %v1189_v46 = vpop.permute.xlu2 %1188 }
 0x40a   :  { %v1204_v3 = vsel %vm1202_vm7, %v1201_v25, %v1189_v46 }
 0x42a   :  { %v1195_v15 = vpop.permute.xlu1 %1194 }
 0x42b   :  { %v1206_v16 = vsel %vm1205_vm8, %v1203_v13, %v1195_v15 }
 0x42c   :  { %1294 = vmatmul.msk.f32.vlgmr.msrb.gmra.mxu2 %vm97_vm0, %v1206_v16 }
 0x432   :  { %v1197_v17 = vpop.permute.xlu1 %1196 }
 0x433   :  { %v1207_v34 = vsel %vm1205_vm8, %v1204_v3, %v1197_v17 }
 0x434   :  { %1295 = vmatmul.msk.f32.gmra.mxu2 %vm97_vm0, %v1207_v34 }
 0x4af   :  { %v1239_v35 = vpop.f32.mrf.mxu2 }
 0x4b0   :  { %v1240_v41 = vadd.f32 %v1418_v31, %v1239_v35 }
 0x4b2   :  { %1245 = vst [vmem:[#allocation10] sm:$0xff] %v1240_v41 }
 0x4b7   :  { %v1242_v20 = vpop.f32.mrf.mxu2 }
 0x4b8   :  { %v1243_v21 = vadd.f32 %v1418_v31, %v1242_v20 }
 0x4ba   :  { %1246 = vst [vmem:[#allocation10 + $0x8] sm:$0xff] %v1243_v21 }
 0x4bb   :  { %1259 = dma.vmem_to_hbm [thread:$0]  %s1252_s10, 256, %s1254_s11, [#allocation4], %s1580_s29, %s1580_s29, %s1581_s30  }
 0x4bc   :  { %1577 = dma.done.wait [#allocation4], 256  }
 0x4bd   :  { %1578 = vsyncadd [#allocation4], 4294967040 }
 0x4be   :  { %1264 = vsyncpa [#allocation3], 1 }
 0x4bf   :  { %1265 = vsyncpa [#allocation6], 1 }
 0x4c0   :  { %1266 = vsyncpa [#allocation9], 1 }
 0x4c1   :  { %1267 = vsyncpa [#allocation4], 1 }

</bundles_post_ra>
